<compile_context>
chip_gen: v6e
topology: v6e:2x2x1
jax: 0.10.0
libtpu: 0.0.40
codegen_flags: <defaults>
</compile_context>

<pallas_src>
import functools
import math

import jax
import jax.numpy as jnp
from jax.experimental import pallas as pl
from jax.experimental.pallas import tpu as pltpu

PHI = (1.0 + 5.0 ** 0.5) / 2.0
LAMBDA = 1.0 / PHI
FIBONACCI_89 = 89.0


def _consciousness_kernel(scales_ref, x_ref, wqkv_ref, bqkv_ref,
                          wout_ref, bout_ref, wtri_ref, btri_ref,
                          wgate_ref, bgate_ref, o_ref,
                          *, nhead, compute_dtype, approx_recip):
    x = x_ref[...]                                   # (Bt, S, D) float32
    Bt, S, D = x.shape
    hd = D // nhead
    N = Bt * S

    xf = x.reshape(N, D)                             # residual kept in f32
    xc = xf.astype(compute_dtype)

    phi = scales_ref[0]                              # learned phi_scale
    lam = scales_ref[1]                              # learned lambda_scale
    branch_scales = (phi, jnp.float32(FIBONACCI_89 / 100.0), lam)

    # Fused QKV projection for all 3 branches: one (N, D) @ (D, 9D) MXU matmul.
    # 1/sqrt(head_dim) is already folded into the Q columns / bias (wrapper).
    qkv = (jnp.dot(xc, wqkv_ref[...], preferred_element_type=jnp.float32)
           + bqkv_ref[...])                          # (N, 9D) f32

    bout_all = bout_ref[...]                         # (3, D) f32
    integrated = jnp.zeros((N, D), jnp.float32)

    for i in range(3):                               # observer / process / response
        base = i * 3 * D
        q3 = qkv[:, base:base + D].reshape(Bt, S, D).astype(compute_dtype)
        k3 = qkv[:, base + D:base + 2 * D].reshape(Bt, S, D).astype(compute_dtype)
        v3 = qkv[:, base + 2 * D:base + 3 * D].reshape(Bt, S, D).astype(compute_dtype)
        wout_i = wout_ref[i]                         # (D, D) compute dtype

        branch_out = jnp.zeros((N, D), jnp.float32)
        for h in range(nhead):                       # static unrolled head loop
            sl = slice(h * hd, (h + 1) * hd)
            qh, kh, vh = q3[:, :, sl], k3[:, :, sl], v3[:, :, sl]
            s = jnp.einsum('bqd,bkd->bqk', qh, kh,
                           preferred_element_type=jnp.float32)   # (Bt, S, S)
            s = s - jnp.max(s, axis=-1, keepdims=True)
            p = jnp.exp(s)
            l = jnp.sum(p, axis=-1, keepdims=True)
            # EUP reciprocal (separate issue slot) instead of a VPU divide.
            p = p * pl.reciprocal(l, approx=approx_recip)
            ctx = jnp.einsum('bqk,bkd->bqd', p.astype(compute_dtype), vh,
                             preferred_element_type=jnp.float32)  # (Bt, S, hd)
            # Accumulate the out-projection per head -> no per-branch concat.
            branch_out = branch_out + jnp.dot(
                ctx.reshape(N, hd).astype(compute_dtype), wout_i[sl, :],
                preferred_element_type=jnp.float32)

        branch_scaled = (branch_out + bout_all[i]) * branch_scales[i]
        # Trinity integration without the (N, 3D) concat: sum of three (D, D) dots.
        integrated = integrated + jnp.dot(
            branch_scaled.astype(compute_dtype), wtri_ref[i],
            preferred_element_type=jnp.float32)

    integrated = integrated + btri_ref[...]           # (1, D) broadcast bias

    # Consciousness gate: VPU multiply + lane reduction (avoids an N=1 MXU dot).
    gate_logit = (jnp.sum(integrated * wgate_ref[...], axis=-1, keepdims=True)
                  + bgate_ref[...])                   # (N, 1)
    gate = jax.nn.sigmoid(gate_logit)

    y = xf + gate * integrated                        # residual add in f32
    o_ref[...] = y.reshape(Bt, S, D).astype(o_ref.dtype)


def _pick_block_b(B, S):
    """Fold batch to fill the MXU rows, but keep >=2 grid steps when possible."""
    bt = max(1, min(B, max(1, 256 // max(S, 1))))
    while bt > 1 and (B // bt) < 2:   # leave work for both v7x TensorCores
        bt -= 1
    while B % bt != 0:
        bt -= 1
    return bt


def consciousness_attention(x, params, *, compute_dtype=jnp.float32,
                            approx_softmax_recip=True, block_b=None):
    B, S, D = x.shape
    nhead = params["nhead"]
    head_dim = D // nhead
    if block_b is None:
        block_b = _pick_block_b(B, S)
    assert B % block_b == 0

    f32 = jnp.float32
    q_scale = 1.0 / math.sqrt(head_dim)
    col_scale = jnp.concatenate(
        [jnp.full((D,), q_scale, f32), jnp.ones((2 * D,), f32)])   # scale Q cols only

    # --- weight prep (glue, not hot path) -----------------------------------
    w_list, b_list = [], []
    for i in range(3):
        wt = params["in_proj_w"][i].T * col_scale[None, :]    # (D, 3D)
        bt = params["in_proj_b"][i] * col_scale               # (3D,)
        w_list.append(wt)
        b_list.append(bt)
    w_qkv = jnp.concatenate(w_list, axis=1).astype(compute_dtype)       # (D, 9D)
    b_qkv = jnp.concatenate(b_list).reshape(1, 9 * D).astype(f32)       # (1, 9D)

    w_out = jnp.transpose(params["out_proj_w"], (0, 2, 1)).astype(compute_dtype)  # (3, D, D)
    b_out = params["out_proj_b"].astype(f32)                                      # (3, D)

    tri_w = params["trinity_w"]                                                    # (D, 3D)
    w_tri = jnp.stack([tri_w[:, i * D:(i + 1) * D].T for i in range(3)]
                      ).astype(compute_dtype)                                      # (3, D, D)
    b_tri = params["trinity_b"].reshape(1, D).astype(f32)                          # (1, D)

    w_gate = params["gate_w"].reshape(1, D).astype(f32)                            # (1, D)
    b_gate = params["gate_b"].reshape(1, 1).astype(f32)                            # (1, 1)

    scales = jnp.array([params["phi_scale"], params["lambda_scale"]], f32)

    kernel = functools.partial(_consciousness_kernel, nhead=nhead,
                               compute_dtype=compute_dtype,
                               approx_recip=approx_softmax_recip)

    def const(shape):
        return pl.BlockSpec(shape, lambda b: (0,) * len(shape))

    # Only raise the scoped-VMEM limit when the estimated footprint needs it
    # (stays within v7x's 64 MiB physical VMEM).
    cbytes = jnp.dtype(compute_dtype).itemsize
    n_rows = block_b * S
    vmem_est = (
        (9 * D * D + 6 * D * D) * cbytes          # fused QKV + out + trinity weights
        + 4 * (9 * D + 4 * D + D + 2)             # biases / gate
        + 2 * 2 * block_b * S * D * 4             # double-buffered x / out tiles
        + n_rows * 9 * D * 4                      # qkv activations
        + 4 * n_rows * D * 4                      # branch_out / integrated / y
        + 3 * block_b * S * S * 4                 # live score tiles headroom
    )
    vmem_limit = None
    if vmem_est > 32 * 1024 * 1024:
        vmem_limit = min(int(vmem_est * 3 // 2), 64 * 1024 * 1024)

    return pl.pallas_call(
        kernel,
        out_shape=jax.ShapeDtypeStruct((B, S, D), x.dtype),
        grid=(B // block_b,),
        in_specs=[
            pl.BlockSpec(memory_space=pltpu.MemorySpace.SMEM),     # phi / lambda scalars
            pl.BlockSpec((block_b, S, D), lambda b: (b, 0, 0)),    # x batch block
            const((D, 9 * D)),                                     # fused QKV weight
            const((1, 9 * D)),                                     # fused QKV bias
            const((3, D, D)),                                      # out_proj weights (T)
            const((3, D)),                                         # out_proj biases
            const((3, D, D)),                                      # trinity weight (split, T)
            const((1, D)),                                         # trinity bias
            const((1, D)),                                         # gate weight row
            const((1, 1)),                                         # gate bias
        ],
        out_specs=pl.BlockSpec((block_b, S, D), lambda b: (b, 0, 0)),
        compiler_params=pltpu.CompilerParams(
            dimension_semantics=("parallel",),
            vmem_limit_bytes=vmem_limit),
    )(scales, x.astype(f32), w_qkv, b_qkv, w_out, b_out, w_tri, b_tri,
      w_gate, b_gate)


def reference(x, params):
    """Pure-JAX reference of the PyTorch forward (no mask)."""
    B, S, D = x.shape
    H = params["nhead"]
    hd = D // H

    def mha(i):
        qkv = x @ params["in_proj_w"][i].T + params["in_proj_b"][i]       # (B, S, 3D)
        q, k, v = jnp.split(qkv, 3, axis=-1)
        q = q.reshape(B, S, H, hd).transpose(0, 2, 1, 3) / math.sqrt(hd)
        k = k.reshape(B, S, H, hd).transpose(0, 2, 1, 3)
        v = v.reshape(B, S, H, hd).transpose(0, 2, 1, 3)
        s = jnp.einsum("bhqd,bhkd->bhqk", q, k)
        p = jax.nn.softmax(s, axis=-1)
        o = jnp.einsum("bhqk,bhkd->bhqd", p, v).transpose(0, 2, 1, 3).reshape(B, S, D)
        return o @ params["out_proj_w"][i].T + params["out_proj_b"][i]

    obs = mha(0) * params["phi_scale"]
    proc = mha(1) * FIBONACCI_89 / 100.0
    resp = mha(2) * params["lambda_scale"]
    cat = jnp.concatenate([obs, proc, resp], axis=-1)
    integrated = cat @ params["trinity_w"].T + params["trinity_b"]
    gate = jax.nn.sigmoid(integrated @ params["gate_w"].T + params["gate_b"])
    return x + gate * integrated


def init_params(key, d_model, nhead):
    ks = jax.random.split(key, 8)
    D = d_model
    return {
        "nhead": nhead,
        "in_proj_w": 0.1 * jax.random.normal(ks[0], (3, 3 * D, D), jnp.float32),
        "in_proj_b": 0.05 * jax.random.normal(ks[1], (3, 3 * D), jnp.float32),
        "out_proj_w": 0.1 * jax.random.normal(ks[2], (3, D, D), jnp.float32),
        "out_proj_b": 0.05 * jax.random.normal(ks[3], (3, D), jnp.float32),
        "trinity_w": 0.1 * jax.random.normal(ks[4], (D, 3 * D), jnp.float32),
        "trinity_b": 0.05 * jax.random.normal(ks[5], (D,), jnp.float32),
        "gate_w": 0.1 * jax.random.normal(ks[6], (1, D), jnp.float32),
        "gate_b": 0.05 * jax.random.normal(ks[7], (1,), jnp.float32),
        "phi_scale": jnp.float32(PHI),
        "lambda_scale": jnp.float32(LAMBDA),
    }


if __name__ == "__main__":
    B, S, D, H = 2, 8, 32, 4
    key = jax.random.PRNGKey(0)
    kx, kp = jax.random.split(key)
    x = jax.random.normal(kx, (B, S, D), jnp.float32)
    params = init_params(kp, D, H)

    ref = reference(x, params)

    # f32 path with exact softmax normalization -> tight check.
    out = jax.block_until_ready(
        consciousness_attention(x, params, compute_dtype=jnp.float32,
                                approx_softmax_recip=False))
    assert out.shape == (B, S, D)
    assert jnp.allclose(out, ref, atol=1e-4, rtol=1e-4), "f32 mismatch vs JAX reference"

    # bf16 fast path (v6e/v7x) with EUP approx reciprocal -> looser tolerance.
    out_bf16 = jax.block_until_ready(
        consciousness_attention(x, params, compute_dtype=jnp.bfloat16))
    assert jnp.allclose(out_bf16, ref, atol=5e-2, rtol=5e-2), "bf16 mismatch vs JAX reference"

    print("KERNEL_OK")
</pallas_src>

<mosaic_0001>
module attributes {stable_mosaic.version = 11 : i64} {
  func.func @_consciousness_kernel(%arg0: i32, %arg1: memref<2xf32, #tpu.memory_space<smem>>, %arg2: memref<1x8x32xf32, #tpu.memory_space<vmem>>, %arg3: memref<32x288xf32, #tpu.memory_space<vmem>>, %arg4: memref<1x288xf32, #tpu.memory_space<vmem>>, %arg5: memref<3x32x32xf32, #tpu.memory_space<vmem>>, %arg6: memref<3x32xf32, #tpu.memory_space<vmem>>, %arg7: memref<3x32x32xf32, #tpu.memory_space<vmem>>, %arg8: memref<1x32xf32, #tpu.memory_space<vmem>>, %arg9: memref<1x32xf32, #tpu.memory_space<vmem>>, %arg10: memref<1x1xf32, #tpu.memory_space<vmem>>, %arg11: memref<1x8x32xf32, #tpu.memory_space<vmem>>) attributes {dimension_semantics = [#tpu.dimension_semantics<parallel>], iteration_bounds = array<i64: 2>, scalar_prefetch = 0 : i64, scratch_operands = 0 : i64, tpu.core_type = #tpu.core_type<tc>, window_params = [{transform_indices = @transform_0, window_bounds = array<i64: 2>}, {transform_indices = @transform_1, window_bounds = array<i64: 1, 8, 32>}, {pipeline_mode = #tpu.pipeline_mode<synchronous>, transform_indices = @transform_2, window_bounds = array<i64: 32, 288>}, {pipeline_mode = #tpu.pipeline_mode<synchronous>, transform_indices = @transform_3, window_bounds = array<i64: 1, 288>}, {pipeline_mode = #tpu.pipeline_mode<synchronous>, transform_indices = @transform_4, window_bounds = array<i64: 3, 32, 32>}, {pipeline_mode = #tpu.pipeline_mode<synchronous>, transform_indices = @transform_5, window_bounds = array<i64: 3, 32>}, {pipeline_mode = #tpu.pipeline_mode<synchronous>, transform_indices = @transform_6, window_bounds = array<i64: 3, 32, 32>}, {pipeline_mode = #tpu.pipeline_mode<synchronous>, transform_indices = @transform_7, window_bounds = array<i64: 1, 32>}, {pipeline_mode = #tpu.pipeline_mode<synchronous>, transform_indices = @transform_8, window_bounds = array<i64: 1, 32>}, {pipeline_mode = #tpu.pipeline_mode<synchronous>, transform_indices = @transform_9, window_bounds = array<i64: 1, 1>}, {transform_indices = @transform_10, window_bounds = array<i64: 1, 8, 32>}]} {
    %c0 = arith.constant 0 : index
    %c0_0 = arith.constant 0 : index
    %c0_1 = arith.constant 0 : index
    %0 = vector.load %arg2[%c0, %c0_0, %c0_1] : memref<1x8x32xf32, #tpu.memory_space<vmem>>, vector<1x8x32xf32>
    %1 = vector.shape_cast %0 : vector<1x8x32xf32> to vector<8x32xf32>
    %c0_2 = arith.constant 0 : index
    %2 = memref.load %arg1[%c0_2] : memref<2xf32, #tpu.memory_space<smem>>
    %c1 = arith.constant 1 : index
    %3 = memref.load %arg1[%c1] : memref<2xf32, #tpu.memory_space<smem>>
    %c0_3 = arith.constant 0 : index
    %c0_4 = arith.constant 0 : index
    %4 = vector.load %arg3[%c0_3, %c0_4] : memref<32x288xf32, #tpu.memory_space<vmem>>, vector<32x288xf32>
    %cst = arith.constant dense<0.000000e+00> : vector<8x288xf32>
    %5 = tpu.matmul %1, %4, %cst {dimension_numbers = #tpu.dot_dimension_numbers<[1], [0], [0], [1], [0, 0, 1, 1], [], []>} : vector<8x32xf32>, vector<32x288xf32>, vector<8x288xf32> -> vector<8x288xf32>
    %c0_5 = arith.constant 0 : index
    %c0_6 = arith.constant 0 : index
    %6 = vector.load %arg4[%c0_5, %c0_6] : memref<1x288xf32, #tpu.memory_space<vmem>>, vector<1x288xf32>
    %7 = vector.broadcast %6 : vector<1x288xf32> to vector<8x288xf32>
    %8 = arith.addf %5, %7 : vector<8x288xf32>
    %c0_7 = arith.constant 0 : index
    %c0_8 = arith.constant 0 : index
    %9 = vector.load %arg6[%c0_7, %c0_8] : memref<3x32xf32, #tpu.memory_space<vmem>>, vector<3x32xf32>
    %cst_9 = arith.constant 0.000000e+00 : f32
    %10 = vector.broadcast %cst_9 : f32 to vector<8x32xf32>
    %11 = vector.extract_strided_slice %8 {offsets = [0, 0], sizes = [8, 32], strides = [1, 1]} : vector<8x288xf32> to vector<8x32xf32>
    %12 = vector.shape_cast %11 : vector<8x32xf32> to vector<1x8x32xf32>
    %13 = vector.extract_strided_slice %8 {offsets = [0, 32], sizes = [8, 32], strides = [1, 1]} : vector<8x288xf32> to vector<8x32xf32>
    %14 = vector.shape_cast %13 : vector<8x32xf32> to vector<1x8x32xf32>
    %15 = vector.extract_strided_slice %8 {offsets = [0, 64], sizes = [8, 32], strides = [1, 1]} : vector<8x288xf32> to vector<8x32xf32>
    %16 = vector.shape_cast %15 : vector<8x32xf32> to vector<1x8x32xf32>
    %c0_10 = arith.constant 0 : index
    %c0_11 = arith.constant 0 : index
    %c0_12 = arith.constant 0 : index
    %17 = vector.load %arg5[%c0_10, %c0_11, %c0_12] : memref<3x32x32xf32, #tpu.memory_space<vmem>>, vector<1x32x32xf32>
    %18 = vector.shape_cast %17 : vector<1x32x32xf32> to vector<32x32xf32>
    %cst_13 = arith.constant 0.000000e+00 : f32
    %19 = vector.broadcast %cst_13 : f32 to vector<8x32xf32>
    %20 = vector.extract_strided_slice %12 {offsets = [0, 0, 0], sizes = [1, 8, 8], strides = [1, 1, 1]} : vector<1x8x32xf32> to vector<1x8x8xf32>
    %21 = vector.extract_strided_slice %14 {offsets = [0, 0, 0], sizes = [1, 8, 8], strides = [1, 1, 1]} : vector<1x8x32xf32> to vector<1x8x8xf32>
    %22 = vector.extract_strided_slice %16 {offsets = [0, 0, 0], sizes = [1, 8, 8], strides = [1, 1, 1]} : vector<1x8x32xf32> to vector<1x8x8xf32>
    "tpu.trace_start"() <{level = 10 : i32, message = "bqd,bkd->bqk"}> : () -> ()
    %cst_14 = arith.constant dense<0.000000e+00> : vector<1x8x8xf32>
    %23 = tpu.matmul %20, %21, %cst_14 {dimension_numbers = #tpu.dot_dimension_numbers<[2], [2], [1], [1], [0, 0, 0, 1, 1, 1], [0], [0]>} : vector<1x8x8xf32>, vector<1x8x8xf32>, vector<1x8x8xf32> -> vector<1x8x8xf32>
    "tpu.trace_stop"() : () -> ()
    %cst_15 = arith.constant dense<0xFF800000> : vector<1x8xf32>
    %24 = vector.multi_reduction <maximumf>, %23, %cst_15 [2] : vector<1x8x8xf32> to vector<1x8xf32>
    %25 = vector.shape_cast %24 : vector<1x8xf32> to vector<1x8x1xf32>
    %26 = vector.broadcast %25 : vector<1x8x1xf32> to vector<1x8x8xf32>
    %27 = arith.subf %23, %26 : vector<1x8x8xf32>
    %28 = math.exp %27 : vector<1x8x8xf32>
    %cst_16 = arith.constant dense<0.000000e+00> : vector<1x8xf32>
    %29 = vector.multi_reduction <add>, %28, %cst_16 [2] : vector<1x8x8xf32> to vector<1x8xf32>
    %30 = vector.shape_cast %29 : vector<1x8xf32> to vector<1x8x1xf32>
    %31 = tpu.reciprocal %30 : vector<1x8x1xf32> -> vector<1x8x1xf32>
    %32 = vector.broadcast %31 : vector<1x8x1xf32> to vector<1x8x8xf32>
    %33 = arith.mulf %28, %32 : vector<1x8x8xf32>
    "tpu.trace_start"() <{level = 10 : i32, message = "bqk,bkd->bqd"}> : () -> ()
    %cst_17 = arith.constant dense<0.000000e+00> : vector<1x8x8xf32>
    %34 = tpu.matmul %33, %22, %cst_17 {dimension_numbers = #tpu.dot_dimension_numbers<[2], [1], [1], [2], [0, 0, 0, 1, 1, 2], [0], [0]>} : vector<1x8x8xf32>, vector<1x8x8xf32>, vector<1x8x8xf32> -> vector<1x8x8xf32>
    "tpu.trace_stop"() : () -> ()
    %35 = vector.shape_cast %34 : vector<1x8x8xf32> to vector<8x8xf32>
    %36 = vector.extract_strided_slice %18 {offsets = [0, 0], sizes = [8, 32], strides = [1, 1]} : vector<32x32xf32> to vector<8x32xf32>
    %cst_18 = arith.constant dense<0.000000e+00> : vector<8x32xf32>
    %37 = tpu.matmul %35, %36, %cst_18 {dimension_numbers = #tpu.dot_dimension_numbers<[1], [0], [0], [1], [0, 0, 1, 1], [], []>} : vector<8x8xf32>, vector<8x32xf32>, vector<8x32xf32> -> vector<8x32xf32>
    %38 = arith.addf %19, %37 : vector<8x32xf32>
    %39 = vector.extract_strided_slice %12 {offsets = [0, 0, 8], sizes = [1, 8, 8], strides = [1, 1, 1]} : vector<1x8x32xf32> to vector<1x8x8xf32>
    %40 = vector.extract_strided_slice %14 {offsets = [0, 0, 8], sizes = [1, 8, 8], strides = [1, 1, 1]} : vector<1x8x32xf32> to vector<1x8x8xf32>
    %41 = vector.extract_strided_slice %16 {offsets = [0, 0, 8], sizes = [1, 8, 8], strides = [1, 1, 1]} : vector<1x8x32xf32> to vector<1x8x8xf32>
    "tpu.trace_start"() <{level = 10 : i32, message = "bqd,bkd->bqk"}> : () -> ()
    %cst_19 = arith.constant dense<0.000000e+00> : vector<1x8x8xf32>
    %42 = tpu.matmul %39, %40, %cst_19 {dimension_numbers = #tpu.dot_dimension_numbers<[2], [2], [1], [1], [0, 0, 0, 1, 1, 1], [0], [0]>} : vector<1x8x8xf32>, vector<1x8x8xf32>, vector<1x8x8xf32> -> vector<1x8x8xf32>
    "tpu.trace_stop"() : () -> ()
    %cst_20 = arith.constant dense<0xFF800000> : vector<1x8xf32>
    %43 = vector.multi_reduction <maximumf>, %42, %cst_20 [2] : vector<1x8x8xf32> to vector<1x8xf32>
    %44 = vector.shape_cast %43 : vector<1x8xf32> to vector<1x8x1xf32>
    %45 = vector.broadcast %44 : vector<1x8x1xf32> to vector<1x8x8xf32>
    %46 = arith.subf %42, %45 : vector<1x8x8xf32>
    %47 = math.exp %46 : vector<1x8x8xf32>
    %cst_21 = arith.constant dense<0.000000e+00> : vector<1x8xf32>
    %48 = vector.multi_reduction <add>, %47, %cst_21 [2] : vector<1x8x8xf32> to vector<1x8xf32>
    %49 = vector.shape_cast %48 : vector<1x8xf32> to vector<1x8x1xf32>
    %50 = tpu.reciprocal %49 : vector<1x8x1xf32> -> vector<1x8x1xf32>
    %51 = vector.broadcast %50 : vector<1x8x1xf32> to vector<1x8x8xf32>
    %52 = arith.mulf %47, %51 : vector<1x8x8xf32>
    "tpu.trace_start"() <{level = 10 : i32, message = "bqk,bkd->bqd"}> : () -> ()
    %cst_22 = arith.constant dense<0.000000e+00> : vector<1x8x8xf32>
    %53 = tpu.matmul %52, %41, %cst_22 {dimension_numbers = #tpu.dot_dimension_numbers<[2], [1], [1], [2], [0, 0, 0, 1, 1, 2], [0], [0]>} : vector<1x8x8xf32>, vector<1x8x8xf32>, vector<1x8x8xf32> -> vector<1x8x8xf32>
    "tpu.trace_stop"() : () -> ()
    %54 = vector.shape_cast %53 : vector<1x8x8xf32> to vector<8x8xf32>
    %55 = vector.extract_strided_slice %18 {offsets = [8, 0], sizes = [8, 32], strides = [1, 1]} : vector<32x32xf32> to vector<8x32xf32>
    %cst_23 = arith.constant dense<0.000000e+00> : vector<8x32xf32>
    %56 = tpu.matmul %54, %55, %cst_23 {dimension_numbers = #tpu.dot_dimension_numbers<[1], [0], [0], [1], [0, 0, 1, 1], [], []>} : vector<8x8xf32>, vector<8x32xf32>, vector<8x32xf32> -> vector<8x32xf32>
    %57 = arith.addf %38, %56 : vector<8x32xf32>
    %58 = vector.extract_strided_slice %12 {offsets = [0, 0, 16], sizes = [1, 8, 8], strides = [1, 1, 1]} : vector<1x8x32xf32> to vector<1x8x8xf32>
    %59 = vector.extract_strided_slice %14 {offsets = [0, 0, 16], sizes = [1, 8, 8], strides = [1, 1, 1]} : vector<1x8x32xf32> to vector<1x8x8xf32>
    %60 = vector.extract_strided_slice %16 {offsets = [0, 0, 16], sizes = [1, 8, 8], strides = [1, 1, 1]} : vector<1x8x32xf32> to vector<1x8x8xf32>
    "tpu.trace_start"() <{level = 10 : i32, message = "bqd,bkd->bqk"}> : () -> ()
    %cst_24 = arith.constant dense<0.000000e+00> : vector<1x8x8xf32>
    %61 = tpu.matmul %58, %59, %cst_24 {dimension_numbers = #tpu.dot_dimension_numbers<[2], [2], [1], [1], [0, 0, 0, 1, 1, 1], [0], [0]>} : vector<1x8x8xf32>, vector<1x8x8xf32>, vector<1x8x8xf32> -> vector<1x8x8xf32>
    "tpu.trace_stop"() : () -> ()
    %cst_25 = arith.constant dense<0xFF800000> : vector<1x8xf32>
    %62 = vector.multi_reduction <maximumf>, %61, %cst_25 [2] : vector<1x8x8xf32> to vector<1x8xf32>
    %63 = vector.shape_cast %62 : vector<1x8xf32> to vector<1x8x1xf32>
    %64 = vector.broadcast %63 : vector<1x8x1xf32> to vector<1x8x8xf32>
    %65 = arith.subf %61, %64 : vector<1x8x8xf32>
    %66 = math.exp %65 : vector<1x8x8xf32>
    %cst_26 = arith.constant dense<0.000000e+00> : vector<1x8xf32>
    %67 = vector.multi_reduction <add>, %66, %cst_26 [2] : vector<1x8x8xf32> to vector<1x8xf32>
    %68 = vector.shape_cast %67 : vector<1x8xf32> to vector<1x8x1xf32>
    %69 = tpu.reciprocal %68 : vector<1x8x1xf32> -> vector<1x8x1xf32>
    %70 = vector.broadcast %69 : vector<1x8x1xf32> to vector<1x8x8xf32>
    %71 = arith.mulf %66, %70 : vector<1x8x8xf32>
    "tpu.trace_start"() <{level = 10 : i32, message = "bqk,bkd->bqd"}> : () -> ()
    %cst_27 = arith.constant dense<0.000000e+00> : vector<1x8x8xf32>
    %72 = tpu.matmul %71, %60, %cst_27 {dimension_numbers = #tpu.dot_dimension_numbers<[2], [1], [1], [2], [0, 0, 0, 1, 1, 2], [0], [0]>} : vector<1x8x8xf32>, vector<1x8x8xf32>, vector<1x8x8xf32> -> vector<1x8x8xf32>
    "tpu.trace_stop"() : () -> ()
    %73 = vector.shape_cast %72 : vector<1x8x8xf32> to vector<8x8xf32>
    %74 = vector.extract_strided_slice %18 {offsets = [16, 0], sizes = [8, 32], strides = [1, 1]} : vector<32x32xf32> to vector<8x32xf32>
    %cst_28 = arith.constant dense<0.000000e+00> : vector<8x32xf32>
    %75 = tpu.matmul %73, %74, %cst_28 {dimension_numbers = #tpu.dot_dimension_numbers<[1], [0], [0], [1], [0, 0, 1, 1], [], []>} : vector<8x8xf32>, vector<8x32xf32>, vector<8x32xf32> -> vector<8x32xf32>
    %76 = arith.addf %57, %75 : vector<8x32xf32>
    %77 = vector.extract_strided_slice %12 {offsets = [0, 0, 24], sizes = [1, 8, 8], strides = [1, 1, 1]} : vector<1x8x32xf32> to vector<1x8x8xf32>
    %78 = vector.extract_strided_slice %14 {offsets = [0, 0, 24], sizes = [1, 8, 8], strides = [1, 1, 1]} : vector<1x8x32xf32> to vector<1x8x8xf32>
    %79 = vector.extract_strided_slice %16 {offsets = [0, 0, 24], sizes = [1, 8, 8], strides = [1, 1, 1]} : vector<1x8x32xf32> to vector<1x8x8xf32>
    "tpu.trace_start"() <{level = 10 : i32, message = "bqd,bkd->bqk"}> : () -> ()
    %cst_29 = arith.constant dense<0.000000e+00> : vector<1x8x8xf32>
    %80 = tpu.matmul %77, %78, %cst_29 {dimension_numbers = #tpu.dot_dimension_numbers<[2], [2], [1], [1], [0, 0, 0, 1, 1, 1], [0], [0]>} : vector<1x8x8xf32>, vector<1x8x8xf32>, vector<1x8x8xf32> -> vector<1x8x8xf32>
    "tpu.trace_stop"() : () -> ()
    %cst_30 = arith.constant dense<0xFF800000> : vector<1x8xf32>
    %81 = vector.multi_reduction <maximumf>, %80, %cst_30 [2] : vector<1x8x8xf32> to vector<1x8xf32>
    %82 = vector.shape_cast %81 : vector<1x8xf32> to vector<1x8x1xf32>
    %83 = vector.broadcast %82 : vector<1x8x1xf32> to vector<1x8x8xf32>
    %84 = arith.subf %80, %83 : vector<1x8x8xf32>
    %85 = math.exp %84 : vector<1x8x8xf32>
    %cst_31 = arith.constant dense<0.000000e+00> : vector<1x8xf32>
    %86 = vector.multi_reduction <add>, %85, %cst_31 [2] : vector<1x8x8xf32> to vector<1x8xf32>
    %87 = vector.shape_cast %86 : vector<1x8xf32> to vector<1x8x1xf32>
    %88 = tpu.reciprocal %87 : vector<1x8x1xf32> -> vector<1x8x1xf32>
    %89 = vector.broadcast %88 : vector<1x8x1xf32> to vector<1x8x8xf32>
    %90 = arith.mulf %85, %89 : vector<1x8x8xf32>
    "tpu.trace_start"() <{level = 10 : i32, message = "bqk,bkd->bqd"}> : () -> ()
    %cst_32 = arith.constant dense<0.000000e+00> : vector<1x8x8xf32>
    %91 = tpu.matmul %90, %79, %cst_32 {dimension_numbers = #tpu.dot_dimension_numbers<[2], [1], [1], [2], [0, 0, 0, 1, 1, 2], [0], [0]>} : vector<1x8x8xf32>, vector<1x8x8xf32>, vector<1x8x8xf32> -> vector<1x8x8xf32>
    "tpu.trace_stop"() : () -> ()
    %92 = vector.shape_cast %91 : vector<1x8x8xf32> to vector<8x8xf32>
    %93 = vector.extract_strided_slice %18 {offsets = [24, 0], sizes = [8, 32], strides = [1, 1]} : vector<32x32xf32> to vector<8x32xf32>
    %cst_33 = arith.constant dense<0.000000e+00> : vector<8x32xf32>
    %94 = tpu.matmul %92, %93, %cst_33 {dimension_numbers = #tpu.dot_dimension_numbers<[1], [0], [0], [1], [0, 0, 1, 1], [], []>} : vector<8x8xf32>, vector<8x32xf32>, vector<8x32xf32> -> vector<8x32xf32>
    %95 = arith.addf %76, %94 : vector<8x32xf32>
    %96 = vector.extract_strided_slice %9 {offsets = [0, 0], sizes = [1, 32], strides = [1, 1]} : vector<3x32xf32> to vector<1x32xf32>
    %97 = vector.shape_cast %96 : vector<1x32xf32> to vector<32xf32>
    %98 = vector.shape_cast %97 : vector<32xf32> to vector<1x32xf32>
    %99 = vector.broadcast %98 : vector<1x32xf32> to vector<8x32xf32>
    %100 = arith.addf %95, %99 : vector<8x32xf32>
    %101 = vector.broadcast %2 : f32 to vector<8x32xf32>
    %102 = arith.mulf %100, %101 : vector<8x32xf32>
    %c0_34 = arith.constant 0 : index
    %c0_35 = arith.constant 0 : index
    %c0_36 = arith.constant 0 : index
    %103 = vector.load %arg7[%c0_34, %c0_35, %c0_36] : memref<3x32x32xf32, #tpu.memory_space<vmem>>, vector<1x32x32xf32>
    %104 = vector.shape_cast %103 : vector<1x32x32xf32> to vector<32x32xf32>
    %cst_37 = arith.constant dense<0.000000e+00> : vector<8x32xf32>
    %105 = tpu.matmul %102, %104, %cst_37 {dimension_numbers = #tpu.dot_dimension_numbers<[1], [0], [0], [1], [0, 0, 1, 1], [], []>} : vector<8x32xf32>, vector<32x32xf32>, vector<8x32xf32> -> vector<8x32xf32>
    %106 = arith.addf %10, %105 : vector<8x32xf32>
    %107 = vector.extract_strided_slice %8 {offsets = [0, 96], sizes = [8, 32], strides = [1, 1]} : vector<8x288xf32> to vector<8x32xf32>
    %108 = vector.shape_cast %107 : vector<8x32xf32> to vector<1x8x32xf32>
    %109 = vector.extract_strided_slice %8 {offsets = [0, 128], sizes = [8, 32], strides = [1, 1]} : vector<8x288xf32> to vector<8x32xf32>
    %110 = vector.shape_cast %109 : vector<8x32xf32> to vector<1x8x32xf32>
    %111 = vector.extract_strided_slice %8 {offsets = [0, 160], sizes = [8, 32], strides = [1, 1]} : vector<8x288xf32> to vector<8x32xf32>
    %112 = vector.shape_cast %111 : vector<8x32xf32> to vector<1x8x32xf32>
    %c1_38 = arith.constant 1 : index
    %c0_39 = arith.constant 0 : index
    %c0_40 = arith.constant 0 : index
    %113 = vector.load %arg5[%c1_38, %c0_39, %c0_40] : memref<3x32x32xf32, #tpu.memory_space<vmem>>, vector<1x32x32xf32>
    %114 = vector.shape_cast %113 : vector<1x32x32xf32> to vector<32x32xf32>
    %cst_41 = arith.constant 0.000000e+00 : f32
    %115 = vector.broadcast %cst_41 : f32 to vector<8x32xf32>
    %116 = vector.extract_strided_slice %108 {offsets = [0, 0, 0], sizes = [1, 8, 8], strides = [1, 1, 1]} : vector<1x8x32xf32> to vector<1x8x8xf32>
    %117 = vector.extract_strided_slice %110 {offsets = [0, 0, 0], sizes = [1, 8, 8], strides = [1, 1, 1]} : vector<1x8x32xf32> to vector<1x8x8xf32>
    %118 = vector.extract_strided_slice %112 {offsets = [0, 0, 0], sizes = [1, 8, 8], strides = [1, 1, 1]} : vector<1x8x32xf32> to vector<1x8x8xf32>
    "tpu.trace_start"() <{level = 10 : i32, message = "bqd,bkd->bqk"}> : () -> ()
    %cst_42 = arith.constant dense<0.000000e+00> : vector<1x8x8xf32>
    %119 = tpu.matmul %116, %117, %cst_42 {dimension_numbers = #tpu.dot_dimension_numbers<[2], [2], [1], [1], [0, 0, 0, 1, 1, 1], [0], [0]>} : vector<1x8x8xf32>, vector<1x8x8xf32>, vector<1x8x8xf32> -> vector<1x8x8xf32>
    "tpu.trace_stop"() : () -> ()
    %cst_43 = arith.constant dense<0xFF800000> : vector<1x8xf32>
    %120 = vector.multi_reduction <maximumf>, %119, %cst_43 [2] : vector<1x8x8xf32> to vector<1x8xf32>
    %121 = vector.shape_cast %120 : vector<1x8xf32> to vector<1x8x1xf32>
    %122 = vector.broadcast %121 : vector<1x8x1xf32> to vector<1x8x8xf32>
    %123 = arith.subf %119, %122 : vector<1x8x8xf32>
    %124 = math.exp %123 : vector<1x8x8xf32>
    %cst_44 = arith.constant dense<0.000000e+00> : vector<1x8xf32>
    %125 = vector.multi_reduction <add>, %124, %cst_44 [2] : vector<1x8x8xf32> to vector<1x8xf32>
    %126 = vector.shape_cast %125 : vector<1x8xf32> to vector<1x8x1xf32>
    %127 = tpu.reciprocal %126 : vector<1x8x1xf32> -> vector<1x8x1xf32>
    %128 = vector.broadcast %127 : vector<1x8x1xf32> to vector<1x8x8xf32>
    %129 = arith.mulf %124, %128 : vector<1x8x8xf32>
    "tpu.trace_start"() <{level = 10 : i32, message = "bqk,bkd->bqd"}> : () -> ()
    %cst_45 = arith.constant dense<0.000000e+00> : vector<1x8x8xf32>
    %130 = tpu.matmul %129, %118, %cst_45 {dimension_numbers = #tpu.dot_dimension_numbers<[2], [1], [1], [2], [0, 0, 0, 1, 1, 2], [0], [0]>} : vector<1x8x8xf32>, vector<1x8x8xf32>, vector<1x8x8xf32> -> vector<1x8x8xf32>
    "tpu.trace_stop"() : () -> ()
    %131 = vector.shape_cast %130 : vector<1x8x8xf32> to vector<8x8xf32>
    %132 = vector.extract_strided_slice %114 {offsets = [0, 0], sizes = [8, 32], strides = [1, 1]} : vector<32x32xf32> to vector<8x32xf32>
    %cst_46 = arith.constant dense<0.000000e+00> : vector<8x32xf32>
    %133 = tpu.matmul %131, %132, %cst_46 {dimension_numbers = #tpu.dot_dimension_numbers<[1], [0], [0], [1], [0, 0, 1, 1], [], []>} : vector<8x8xf32>, vector<8x32xf32>, vector<8x32xf32> -> vector<8x32xf32>
    %134 = arith.addf %115, %133 : vector<8x32xf32>
    %135 = vector.extract_strided_slice %108 {offsets = [0, 0, 8], sizes = [1, 8, 8], strides = [1, 1, 1]} : vector<1x8x32xf32> to vector<1x8x8xf32>
    %136 = vector.extract_strided_slice %110 {offsets = [0, 0, 8], sizes = [1, 8, 8], strides = [1, 1, 1]} : vector<1x8x32xf32> to vector<1x8x8xf32>
    %137 = vector.extract_strided_slice %112 {offsets = [0, 0, 8], sizes = [1, 8, 8], strides = [1, 1, 1]} : vector<1x8x32xf32> to vector<1x8x8xf32>
    "tpu.trace_start"() <{level = 10 : i32, message = "bqd,bkd->bqk"}> : () -> ()
    %cst_47 = arith.constant dense<0.000000e+00> : vector<1x8x8xf32>
    %138 = tpu.matmul %135, %136, %cst_47 {dimension_numbers = #tpu.dot_dimension_numbers<[2], [2], [1], [1], [0, 0, 0, 1, 1, 1], [0], [0]>} : vector<1x8x8xf32>, vector<1x8x8xf32>, vector<1x8x8xf32> -> vector<1x8x8xf32>
    "tpu.trace_stop"() : () -> ()
    %cst_48 = arith.constant dense<0xFF800000> : vector<1x8xf32>
    %139 = vector.multi_reduction <maximumf>, %138, %cst_48 [2] : vector<1x8x8xf32> to vector<1x8xf32>
    %140 = vector.shape_cast %139 : vector<1x8xf32> to vector<1x8x1xf32>
    %141 = vector.broadcast %140 : vector<1x8x1xf32> to vector<1x8x8xf32>
    %142 = arith.subf %138, %141 : vector<1x8x8xf32>
    %143 = math.exp %142 : vector<1x8x8xf32>
    %cst_49 = arith.constant dense<0.000000e+00> : vector<1x8xf32>
    %144 = vector.multi_reduction <add>, %143, %cst_49 [2] : vector<1x8x8xf32> to vector<1x8xf32>
    %145 = vector.shape_cast %144 : vector<1x8xf32> to vector<1x8x1xf32>
    %146 = tpu.reciprocal %145 : vector<1x8x1xf32> -> vector<1x8x1xf32>
    %147 = vector.broadcast %146 : vector<1x8x1xf32> to vector<1x8x8xf32>
    %148 = arith.mulf %143, %147 : vector<1x8x8xf32>
    "tpu.trace_start"() <{level = 10 : i32, message = "bqk,bkd->bqd"}> : () -> ()
    %cst_50 = arith.constant dense<0.000000e+00> : vector<1x8x8xf32>
    %149 = tpu.matmul %148, %137, %cst_50 {dimension_numbers = #tpu.dot_dimension_numbers<[2], [1], [1], [2], [0, 0, 0, 1, 1, 2], [0], [0]>} : vector<1x8x8xf32>, vector<1x8x8xf32>, vector<1x8x8xf32> -> vector<1x8x8xf32>
    "tpu.trace_stop"() : () -> ()
    %150 = vector.shape_cast %149 : vector<1x8x8xf32> to vector<8x8xf32>
    %151 = vector.extract_strided_slice %114 {offsets = [8, 0], sizes = [8, 32], strides = [1, 1]} : vector<32x32xf32> to vector<8x32xf32>
    %cst_51 = arith.constant dense<0.000000e+00> : vector<8x32xf32>
    %152 = tpu.matmul %150, %151, %cst_51 {dimension_numbers = #tpu.dot_dimension_numbers<[1], [0], [0], [1], [0, 0, 1, 1], [], []>} : vector<8x8xf32>, vector<8x32xf32>, vector<8x32xf32> -> vector<8x32xf32>
    %153 = arith.addf %134, %152 : vector<8x32xf32>
    %154 = vector.extract_strided_slice %108 {offsets = [0, 0, 16], sizes = [1, 8, 8], strides = [1, 1, 1]} : vector<1x8x32xf32> to vector<1x8x8xf32>
    %155 = vector.extract_strided_slice %110 {offsets = [0, 0, 16], sizes = [1, 8, 8], strides = [1, 1, 1]} : vector<1x8x32xf32> to vector<1x8x8xf32>
    %156 = vector.extract_strided_slice %112 {offsets = [0, 0, 16], sizes = [1, 8, 8], strides = [1, 1, 1]} : vector<1x8x32xf32> to vector<1x8x8xf32>
    "tpu.trace_start"() <{level = 10 : i32, message = "bqd,bkd->bqk"}> : () -> ()
    %cst_52 = arith.constant dense<0.000000e+00> : vector<1x8x8xf32>
    %157 = tpu.matmul %154, %155, %cst_52 {dimension_numbers = #tpu.dot_dimension_numbers<[2], [2], [1], [1], [0, 0, 0, 1, 1, 1], [0], [0]>} : vector<1x8x8xf32>, vector<1x8x8xf32>, vector<1x8x8xf32> -> vector<1x8x8xf32>
    "tpu.trace_stop"() : () -> ()
    %cst_53 = arith.constant dense<0xFF800000> : vector<1x8xf32>
    %158 = vector.multi_reduction <maximumf>, %157, %cst_53 [2] : vector<1x8x8xf32> to vector<1x8xf32>
    %159 = vector.shape_cast %158 : vector<1x8xf32> to vector<1x8x1xf32>
    %160 = vector.broadcast %159 : vector<1x8x1xf32> to vector<1x8x8xf32>
    %161 = arith.subf %157, %160 : vector<1x8x8xf32>
    %162 = math.exp %161 : vector<1x8x8xf32>
    %cst_54 = arith.constant dense<0.000000e+00> : vector<1x8xf32>
    %163 = vector.multi_reduction <add>, %162, %cst_54 [2] : vector<1x8x8xf32> to vector<1x8xf32>
    %164 = vector.shape_cast %163 : vector<1x8xf32> to vector<1x8x1xf32>
    %165 = tpu.reciprocal %164 : vector<1x8x1xf32> -> vector<1x8x1xf32>
    %166 = vector.broadcast %165 : vector<1x8x1xf32> to vector<1x8x8xf32>
    %167 = arith.mulf %162, %166 : vector<1x8x8xf32>
    "tpu.trace_start"() <{level = 10 : i32, message = "bqk,bkd->bqd"}> : () -> ()
    %cst_55 = arith.constant dense<0.000000e+00> : vector<1x8x8xf32>
    %168 = tpu.matmul %167, %156, %cst_55 {dimension_numbers = #tpu.dot_dimension_numbers<[2], [1], [1], [2], [0, 0, 0, 1, 1, 2], [0], [0]>} : vector<1x8x8xf32>, vector<1x8x8xf32>, vector<1x8x8xf32> -> vector<1x8x8xf32>
    "tpu.trace_stop"() : () -> ()
    %169 = vector.shape_cast %168 : vector<1x8x8xf32> to vector<8x8xf32>
    %170 = vector.extract_strided_slice %114 {offsets = [16, 0], sizes = [8, 32], strides = [1, 1]} : vector<32x32xf32> to vector<8x32xf32>
    %cst_56 = arith.constant dense<0.000000e+00> : vector<8x32xf32>
    %171 = tpu.matmul %169, %170, %cst_56 {dimension_numbers = #tpu.dot_dimension_numbers<[1], [0], [0], [1], [0, 0, 1, 1], [], []>} : vector<8x8xf32>, vector<8x32xf32>, vector<8x32xf32> -> vector<8x32xf32>
    %172 = arith.addf %153, %171 : vector<8x32xf32>
    %173 = vector.extract_strided_slice %108 {offsets = [0, 0, 24], sizes = [1, 8, 8], strides = [1, 1, 1]} : vector<1x8x32xf32> to vector<1x8x8xf32>
    %174 = vector.extract_strided_slice %110 {offsets = [0, 0, 24], sizes = [1, 8, 8], strides = [1, 1, 1]} : vector<1x8x32xf32> to vector<1x8x8xf32>
    %175 = vector.extract_strided_slice %112 {offsets = [0, 0, 24], sizes = [1, 8, 8], strides = [1, 1, 1]} : vector<1x8x32xf32> to vector<1x8x8xf32>
    "tpu.trace_start"() <{level = 10 : i32, message = "bqd,bkd->bqk"}> : () -> ()
    %cst_57 = arith.constant dense<0.000000e+00> : vector<1x8x8xf32>
    %176 = tpu.matmul %173, %174, %cst_57 {dimension_numbers = #tpu.dot_dimension_numbers<[2], [2], [1], [1], [0, 0, 0, 1, 1, 1], [0], [0]>} : vector<1x8x8xf32>, vector<1x8x8xf32>, vector<1x8x8xf32> -> vector<1x8x8xf32>
    "tpu.trace_stop"() : () -> ()
    %cst_58 = arith.constant dense<0xFF800000> : vector<1x8xf32>
    %177 = vector.multi_reduction <maximumf>, %176, %cst_58 [2] : vector<1x8x8xf32> to vector<1x8xf32>
    %178 = vector.shape_cast %177 : vector<1x8xf32> to vector<1x8x1xf32>
    %179 = vector.broadcast %178 : vector<1x8x1xf32> to vector<1x8x8xf32>
    %180 = arith.subf %176, %179 : vector<1x8x8xf32>
    %181 = math.exp %180 : vector<1x8x8xf32>
    %cst_59 = arith.constant dense<0.000000e+00> : vector<1x8xf32>
    %182 = vector.multi_reduction <add>, %181, %cst_59 [2] : vector<1x8x8xf32> to vector<1x8xf32>
    %183 = vector.shape_cast %182 : vector<1x8xf32> to vector<1x8x1xf32>
    %184 = tpu.reciprocal %183 : vector<1x8x1xf32> -> vector<1x8x1xf32>
    %185 = vector.broadcast %184 : vector<1x8x1xf32> to vector<1x8x8xf32>
    %186 = arith.mulf %181, %185 : vector<1x8x8xf32>
    "tpu.trace_start"() <{level = 10 : i32, message = "bqk,bkd->bqd"}> : () -> ()
    %cst_60 = arith.constant dense<0.000000e+00> : vector<1x8x8xf32>
    %187 = tpu.matmul %186, %175, %cst_60 {dimension_numbers = #tpu.dot_dimension_numbers<[2], [1], [1], [2], [0, 0, 0, 1, 1, 2], [0], [0]>} : vector<1x8x8xf32>, vector<1x8x8xf32>, vector<1x8x8xf32> -> vector<1x8x8xf32>
    "tpu.trace_stop"() : () -> ()
    %188 = vector.shape_cast %187 : vector<1x8x8xf32> to vector<8x8xf32>
    %189 = vector.extract_strided_slice %114 {offsets = [24, 0], sizes = [8, 32], strides = [1, 1]} : vector<32x32xf32> to vector<8x32xf32>
    %cst_61 = arith.constant dense<0.000000e+00> : vector<8x32xf32>
    %190 = tpu.matmul %188, %189, %cst_61 {dimension_numbers = #tpu.dot_dimension_numbers<[1], [0], [0], [1], [0, 0, 1, 1], [], []>} : vector<8x8xf32>, vector<8x32xf32>, vector<8x32xf32> -> vector<8x32xf32>
    %191 = arith.addf %172, %190 : vector<8x32xf32>
    %192 = vector.extract_strided_slice %9 {offsets = [1, 0], sizes = [1, 32], strides = [1, 1]} : vector<3x32xf32> to vector<1x32xf32>
    %193 = vector.shape_cast %192 : vector<1x32xf32> to vector<32xf32>
    %194 = vector.shape_cast %193 : vector<32xf32> to vector<1x32xf32>
    %195 = vector.broadcast %194 : vector<1x32xf32> to vector<8x32xf32>
    %196 = arith.addf %191, %195 : vector<8x32xf32>
    %cst_62 = arith.constant 0.889999985 : f32
    %197 = vector.broadcast %cst_62 : f32 to vector<8x32xf32>
    %198 = arith.mulf %196, %197 : vector<8x32xf32>
    %c1_63 = arith.constant 1 : index
    %c0_64 = arith.constant 0 : index
    %c0_65 = arith.constant 0 : index
    %199 = vector.load %arg7[%c1_63, %c0_64, %c0_65] : memref<3x32x32xf32, #tpu.memory_space<vmem>>, vector<1x32x32xf32>
    %200 = vector.shape_cast %199 : vector<1x32x32xf32> to vector<32x32xf32>
    %cst_66 = arith.constant dense<0.000000e+00> : vector<8x32xf32>
    %201 = tpu.matmul %198, %200, %cst_66 {dimension_numbers = #tpu.dot_dimension_numbers<[1], [0], [0], [1], [0, 0, 1, 1], [], []>} : vector<8x32xf32>, vector<32x32xf32>, vector<8x32xf32> -> vector<8x32xf32>
    %202 = arith.addf %106, %201 : vector<8x32xf32>
    %203 = vector.extract_strided_slice %8 {offsets = [0, 192], sizes = [8, 32], strides = [1, 1]} : vector<8x288xf32> to vector<8x32xf32>
    %204 = vector.shape_cast %203 : vector<8x32xf32> to vector<1x8x32xf32>
    %205 = vector.extract_strided_slice %8 {offsets = [0, 224], sizes = [8, 32], strides = [1, 1]} : vector<8x288xf32> to vector<8x32xf32>
    %206 = vector.shape_cast %205 : vector<8x32xf32> to vector<1x8x32xf32>
    %207 = vector.extract_strided_slice %8 {offsets = [0, 256], sizes = [8, 32], strides = [1, 1]} : vector<8x288xf32> to vector<8x32xf32>
    %208 = vector.shape_cast %207 : vector<8x32xf32> to vector<1x8x32xf32>
    %c2 = arith.constant 2 : index
    %c0_67 = arith.constant 0 : index
    %c0_68 = arith.constant 0 : index
    %209 = vector.load %arg5[%c2, %c0_67, %c0_68] : memref<3x32x32xf32, #tpu.memory_space<vmem>>, vector<1x32x32xf32>
    %210 = vector.shape_cast %209 : vector<1x32x32xf32> to vector<32x32xf32>
    %cst_69 = arith.constant 0.000000e+00 : f32
    %211 = vector.broadcast %cst_69 : f32 to vector<8x32xf32>
    %212 = vector.extract_strided_slice %204 {offsets = [0, 0, 0], sizes = [1, 8, 8], strides = [1, 1, 1]} : vector<1x8x32xf32> to vector<1x8x8xf32>
    %213 = vector.extract_strided_slice %206 {offsets = [0, 0, 0], sizes = [1, 8, 8], strides = [1, 1, 1]} : vector<1x8x32xf32> to vector<1x8x8xf32>
    %214 = vector.extract_strided_slice %208 {offsets = [0, 0, 0], sizes = [1, 8, 8], strides = [1, 1, 1]} : vector<1x8x32xf32> to vector<1x8x8xf32>
    "tpu.trace_start"() <{level = 10 : i32, message = "bqd,bkd->bqk"}> : () -> ()
    %cst_70 = arith.constant dense<0.000000e+00> : vector<1x8x8xf32>
    %215 = tpu.matmul %212, %213, %cst_70 {dimension_numbers = #tpu.dot_dimension_numbers<[2], [2], [1], [1], [0, 0, 0, 1, 1, 1], [0], [0]>} : vector<1x8x8xf32>, vector<1x8x8xf32>, vector<1x8x8xf32> -> vector<1x8x8xf32>
    "tpu.trace_stop"() : () -> ()
    %cst_71 = arith.constant dense<0xFF800000> : vector<1x8xf32>
    %216 = vector.multi_reduction <maximumf>, %215, %cst_71 [2] : vector<1x8x8xf32> to vector<1x8xf32>
    %217 = vector.shape_cast %216 : vector<1x8xf32> to vector<1x8x1xf32>
    %218 = vector.broadcast %217 : vector<1x8x1xf32> to vector<1x8x8xf32>
    %219 = arith.subf %215, %218 : vector<1x8x8xf32>
    %220 = math.exp %219 : vector<1x8x8xf32>
    %cst_72 = arith.constant dense<0.000000e+00> : vector<1x8xf32>
    %221 = vector.multi_reduction <add>, %220, %cst_72 [2] : vector<1x8x8xf32> to vector<1x8xf32>
    %222 = vector.shape_cast %221 : vector<1x8xf32> to vector<1x8x1xf32>
    %223 = tpu.reciprocal %222 : vector<1x8x1xf32> -> vector<1x8x1xf32>
    %224 = vector.broadcast %223 : vector<1x8x1xf32> to vector<1x8x8xf32>
    %225 = arith.mulf %220, %224 : vector<1x8x8xf32>
    "tpu.trace_start"() <{level = 10 : i32, message = "bqk,bkd->bqd"}> : () -> ()
    %cst_73 = arith.constant dense<0.000000e+00> : vector<1x8x8xf32>
    %226 = tpu.matmul %225, %214, %cst_73 {dimension_numbers = #tpu.dot_dimension_numbers<[2], [1], [1], [2], [0, 0, 0, 1, 1, 2], [0], [0]>} : vector<1x8x8xf32>, vector<1x8x8xf32>, vector<1x8x8xf32> -> vector<1x8x8xf32>
    "tpu.trace_stop"() : () -> ()
    %227 = vector.shape_cast %226 : vector<1x8x8xf32> to vector<8x8xf32>
    %228 = vector.extract_strided_slice %210 {offsets = [0, 0], sizes = [8, 32], strides = [1, 1]} : vector<32x32xf32> to vector<8x32xf32>
    %cst_74 = arith.constant dense<0.000000e+00> : vector<8x32xf32>
    %229 = tpu.matmul %227, %228, %cst_74 {dimension_numbers = #tpu.dot_dimension_numbers<[1], [0], [0], [1], [0, 0, 1, 1], [], []>} : vector<8x8xf32>, vector<8x32xf32>, vector<8x32xf32> -> vector<8x32xf32>
    %230 = arith.addf %211, %229 : vector<8x32xf32>
    %231 = vector.extract_strided_slice %204 {offsets = [0, 0, 8], sizes = [1, 8, 8], strides = [1, 1, 1]} : vector<1x8x32xf32> to vector<1x8x8xf32>
    %232 = vector.extract_strided_slice %206 {offsets = [0, 0, 8], sizes = [1, 8, 8], strides = [1, 1, 1]} : vector<1x8x32xf32> to vector<1x8x8xf32>
    %233 = vector.extract_strided_slice %208 {offsets = [0, 0, 8], sizes = [1, 8, 8], strides = [1, 1, 1]} : vector<1x8x32xf32> to vector<1x8x8xf32>
    "tpu.trace_start"() <{level = 10 : i32, message = "bqd,bkd->bqk"}> : () -> ()
    %cst_75 = arith.constant dense<0.000000e+00> : vector<1x8x8xf32>
    %234 = tpu.matmul %231, %232, %cst_75 {dimension_numbers = #tpu.dot_dimension_numbers<[2], [2], [1], [1], [0, 0, 0, 1, 1, 1], [0], [0]>} : vector<1x8x8xf32>, vector<1x8x8xf32>, vector<1x8x8xf32> -> vector<1x8x8xf32>
    "tpu.trace_stop"() : () -> ()
    %cst_76 = arith.constant dense<0xFF800000> : vector<1x8xf32>
    %235 = vector.multi_reduction <maximumf>, %234, %cst_76 [2] : vector<1x8x8xf32> to vector<1x8xf32>
    %236 = vector.shape_cast %235 : vector<1x8xf32> to vector<1x8x1xf32>
    %237 = vector.broadcast %236 : vector<1x8x1xf32> to vector<1x8x8xf32>
    %238 = arith.subf %234, %237 : vector<1x8x8xf32>
    %239 = math.exp %238 : vector<1x8x8xf32>
    %cst_77 = arith.constant dense<0.000000e+00> : vector<1x8xf32>
    %240 = vector.multi_reduction <add>, %239, %cst_77 [2] : vector<1x8x8xf32> to vector<1x8xf32>
    %241 = vector.shape_cast %240 : vector<1x8xf32> to vector<1x8x1xf32>
    %242 = tpu.reciprocal %241 : vector<1x8x1xf32> -> vector<1x8x1xf32>
    %243 = vector.broadcast %242 : vector<1x8x1xf32> to vector<1x8x8xf32>
    %244 = arith.mulf %239, %243 : vector<1x8x8xf32>
    "tpu.trace_start"() <{level = 10 : i32, message = "bqk,bkd->bqd"}> : () -> ()
    %cst_78 = arith.constant dense<0.000000e+00> : vector<1x8x8xf32>
    %245 = tpu.matmul %244, %233, %cst_78 {dimension_numbers = #tpu.dot_dimension_numbers<[2], [1], [1], [2], [0, 0, 0, 1, 1, 2], [0], [0]>} : vector<1x8x8xf32>, vector<1x8x8xf32>, vector<1x8x8xf32> -> vector<1x8x8xf32>
    "tpu.trace_stop"() : () -> ()
    %246 = vector.shape_cast %245 : vector<1x8x8xf32> to vector<8x8xf32>
    %247 = vector.extract_strided_slice %210 {offsets = [8, 0], sizes = [8, 32], strides = [1, 1]} : vector<32x32xf32> to vector<8x32xf32>
    %cst_79 = arith.constant dense<0.000000e+00> : vector<8x32xf32>
    %248 = tpu.matmul %246, %247, %cst_79 {dimension_numbers = #tpu.dot_dimension_numbers<[1], [0], [0], [1], [0, 0, 1, 1], [], []>} : vector<8x8xf32>, vector<8x32xf32>, vector<8x32xf32> -> vector<8x32xf32>
    %249 = arith.addf %230, %248 : vector<8x32xf32>
    %250 = vector.extract_strided_slice %204 {offsets = [0, 0, 16], sizes = [1, 8, 8], strides = [1, 1, 1]} : vector<1x8x32xf32> to vector<1x8x8xf32>
    %251 = vector.extract_strided_slice %206 {offsets = [0, 0, 16], sizes = [1, 8, 8], strides = [1, 1, 1]} : vector<1x8x32xf32> to vector<1x8x8xf32>
    %252 = vector.extract_strided_slice %208 {offsets = [0, 0, 16], sizes = [1, 8, 8], strides = [1, 1, 1]} : vector<1x8x32xf32> to vector<1x8x8xf32>
    "tpu.trace_start"() <{level = 10 : i32, message = "bqd,bkd->bqk"}> : () -> ()
    %cst_80 = arith.constant dense<0.000000e+00> : vector<1x8x8xf32>
    %253 = tpu.matmul %250, %251, %cst_80 {dimension_numbers = #tpu.dot_dimension_numbers<[2], [2], [1], [1], [0, 0, 0, 1, 1, 1], [0], [0]>} : vector<1x8x8xf32>, vector<1x8x8xf32>, vector<1x8x8xf32> -> vector<1x8x8xf32>
    "tpu.trace_stop"() : () -> ()
    %cst_81 = arith.constant dense<0xFF800000> : vector<1x8xf32>
    %254 = vector.multi_reduction <maximumf>, %253, %cst_81 [2] : vector<1x8x8xf32> to vector<1x8xf32>
    %255 = vector.shape_cast %254 : vector<1x8xf32> to vector<1x8x1xf32>
    %256 = vector.broadcast %255 : vector<1x8x1xf32> to vector<1x8x8xf32>
    %257 = arith.subf %253, %256 : vector<1x8x8xf32>
    %258 = math.exp %257 : vector<1x8x8xf32>
    %cst_82 = arith.constant dense<0.000000e+00> : vector<1x8xf32>
    %259 = vector.multi_reduction <add>, %258, %cst_82 [2] : vector<1x8x8xf32> to vector<1x8xf32>
    %260 = vector.shape_cast %259 : vector<1x8xf32> to vector<1x8x1xf32>
    %261 = tpu.reciprocal %260 : vector<1x8x1xf32> -> vector<1x8x1xf32>
    %262 = vector.broadcast %261 : vector<1x8x1xf32> to vector<1x8x8xf32>
    %263 = arith.mulf %258, %262 : vector<1x8x8xf32>
    "tpu.trace_start"() <{level = 10 : i32, message = "bqk,bkd->bqd"}> : () -> ()
    %cst_83 = arith.constant dense<0.000000e+00> : vector<1x8x8xf32>
    %264 = tpu.matmul %263, %252, %cst_83 {dimension_numbers = #tpu.dot_dimension_numbers<[2], [1], [1], [2], [0, 0, 0, 1, 1, 2], [0], [0]>} : vector<1x8x8xf32>, vector<1x8x8xf32>, vector<1x8x8xf32> -> vector<1x8x8xf32>
    "tpu.trace_stop"() : () -> ()
    %265 = vector.shape_cast %264 : vector<1x8x8xf32> to vector<8x8xf32>
    %266 = vector.extract_strided_slice %210 {offsets = [16, 0], sizes = [8, 32], strides = [1, 1]} : vector<32x32xf32> to vector<8x32xf32>
    %cst_84 = arith.constant dense<0.000000e+00> : vector<8x32xf32>
    %267 = tpu.matmul %265, %266, %cst_84 {dimension_numbers = #tpu.dot_dimension_numbers<[1], [0], [0], [1], [0, 0, 1, 1], [], []>} : vector<8x8xf32>, vector<8x32xf32>, vector<8x32xf32> -> vector<8x32xf32>
    %268 = arith.addf %249, %267 : vector<8x32xf32>
    %269 = vector.extract_strided_slice %204 {offsets = [0, 0, 24], sizes = [1, 8, 8], strides = [1, 1, 1]} : vector<1x8x32xf32> to vector<1x8x8xf32>
    %270 = vector.extract_strided_slice %206 {offsets = [0, 0, 24], sizes = [1, 8, 8], strides = [1, 1, 1]} : vector<1x8x32xf32> to vector<1x8x8xf32>
    %271 = vector.extract_strided_slice %208 {offsets = [0, 0, 24], sizes = [1, 8, 8], strides = [1, 1, 1]} : vector<1x8x32xf32> to vector<1x8x8xf32>
    "tpu.trace_start"() <{level = 10 : i32, message = "bqd,bkd->bqk"}> : () -> ()
    %cst_85 = arith.constant dense<0.000000e+00> : vector<1x8x8xf32>
    %272 = tpu.matmul %269, %270, %cst_85 {dimension_numbers = #tpu.dot_dimension_numbers<[2], [2], [1], [1], [0, 0, 0, 1, 1, 1], [0], [0]>} : vector<1x8x8xf32>, vector<1x8x8xf32>, vector<1x8x8xf32> -> vector<1x8x8xf32>
    "tpu.trace_stop"() : () -> ()
    %cst_86 = arith.constant dense<0xFF800000> : vector<1x8xf32>
    %273 = vector.multi_reduction <maximumf>, %272, %cst_86 [2] : vector<1x8x8xf32> to vector<1x8xf32>
    %274 = vector.shape_cast %273 : vector<1x8xf32> to vector<1x8x1xf32>
    %275 = vector.broadcast %274 : vector<1x8x1xf32> to vector<1x8x8xf32>
    %276 = arith.subf %272, %275 : vector<1x8x8xf32>
    %277 = math.exp %276 : vector<1x8x8xf32>
    %cst_87 = arith.constant dense<0.000000e+00> : vector<1x8xf32>
    %278 = vector.multi_reduction <add>, %277, %cst_87 [2] : vector<1x8x8xf32> to vector<1x8xf32>
    %279 = vector.shape_cast %278 : vector<1x8xf32> to vector<1x8x1xf32>
    %280 = tpu.reciprocal %279 : vector<1x8x1xf32> -> vector<1x8x1xf32>
    %281 = vector.broadcast %280 : vector<1x8x1xf32> to vector<1x8x8xf32>
    %282 = arith.mulf %277, %281 : vector<1x8x8xf32>
    "tpu.trace_start"() <{level = 10 : i32, message = "bqk,bkd->bqd"}> : () -> ()
    %cst_88 = arith.constant dense<0.000000e+00> : vector<1x8x8xf32>
    %283 = tpu.matmul %282, %271, %cst_88 {dimension_numbers = #tpu.dot_dimension_numbers<[2], [1], [1], [2], [0, 0, 0, 1, 1, 2], [0], [0]>} : vector<1x8x8xf32>, vector<1x8x8xf32>, vector<1x8x8xf32> -> vector<1x8x8xf32>
    "tpu.trace_stop"() : () -> ()
    %284 = vector.shape_cast %283 : vector<1x8x8xf32> to vector<8x8xf32>
    %285 = vector.extract_strided_slice %210 {offsets = [24, 0], sizes = [8, 32], strides = [1, 1]} : vector<32x32xf32> to vector<8x32xf32>
    %cst_89 = arith.constant dense<0.000000e+00> : vector<8x32xf32>
    %286 = tpu.matmul %284, %285, %cst_89 {dimension_numbers = #tpu.dot_dimension_numbers<[1], [0], [0], [1], [0, 0, 1, 1], [], []>} : vector<8x8xf32>, vector<8x32xf32>, vector<8x32xf32> -> vector<8x32xf32>
    %287 = arith.addf %268, %286 : vector<8x32xf32>
    %288 = vector.extract_strided_slice %9 {offsets = [2, 0], sizes = [1, 32], strides = [1, 1]} : vector<3x32xf32> to vector<1x32xf32>
    %289 = vector.shape_cast %288 : vector<1x32xf32> to vector<32xf32>
    %290 = vector.shape_cast %289 : vector<32xf32> to vector<1x32xf32>
    %291 = vector.broadcast %290 : vector<1x32xf32> to vector<8x32xf32>
    %292 = arith.addf %287, %291 : vector<8x32xf32>
    %293 = vector.broadcast %3 : f32 to vector<8x32xf32>
    %294 = arith.mulf %292, %293 : vector<8x32xf32>
    %c2_90 = arith.constant 2 : index
    %c0_91 = arith.constant 0 : index
    %c0_92 = arith.constant 0 : index
    %295 = vector.load %arg7[%c2_90, %c0_91, %c0_92] : memref<3x32x32xf32, #tpu.memory_space<vmem>>, vector<1x32x32xf32>
    %296 = vector.shape_cast %295 : vector<1x32x32xf32> to vector<32x32xf32>
    %cst_93 = arith.constant dense<0.000000e+00> : vector<8x32xf32>
    %297 = tpu.matmul %294, %296, %cst_93 {dimension_numbers = #tpu.dot_dimension_numbers<[1], [0], [0], [1], [0, 0, 1, 1], [], []>} : vector<8x32xf32>, vector<32x32xf32>, vector<8x32xf32> -> vector<8x32xf32>
    %298 = arith.addf %202, %297 : vector<8x32xf32>
    %c0_94 = arith.constant 0 : index
    %c0_95 = arith.constant 0 : index
    %299 = vector.load %arg8[%c0_94, %c0_95] : memref<1x32xf32, #tpu.memory_space<vmem>>, vector<1x32xf32>
    %300 = vector.broadcast %299 : vector<1x32xf32> to vector<8x32xf32>
    %301 = arith.addf %298, %300 : vector<8x32xf32>
    %c0_96 = arith.constant 0 : index
    %c0_97 = arith.constant 0 : index
    %302 = vector.load %arg9[%c0_96, %c0_97] : memref<1x32xf32, #tpu.memory_space<vmem>>, vector<1x32xf32>
    %303 = vector.broadcast %302 : vector<1x32xf32> to vector<8x32xf32>
    %304 = arith.mulf %301, %303 : vector<8x32xf32>
    %cst_98 = arith.constant dense<0.000000e+00> : vector<8xf32>
    %305 = vector.multi_reduction <add>, %304, %cst_98 [1] : vector<8x32xf32> to vector<8xf32>
    %306 = vector.shape_cast %305 : vector<8xf32> to vector<8x1xf32>
    %c0_99 = arith.constant 0 : index
    %c0_100 = arith.constant 0 : index
    %307 = vector.load %arg10[%c0_99, %c0_100] : memref<1x1xf32, #tpu.memory_space<vmem>>, vector<1x1xf32>
    %308 = vector.broadcast %307 : vector<1x1xf32> to vector<8x1xf32>
    %309 = arith.addf %306, %308 : vector<8x1xf32>
    %310 = arith.negf %309 : vector<8x1xf32>
    %311 = math.exp %310 : vector<8x1xf32>
    %cst_101 = arith.constant 1.000000e+00 : f32
    %312 = vector.broadcast %cst_101 : f32 to vector<8x1xf32>
    %313 = arith.addf %312, %311 : vector<8x1xf32>
    %314 = arith.divf %312, %313 : vector<8x1xf32>
    %315 = vector.broadcast %314 : vector<8x1xf32> to vector<8x32xf32>
    %316 = arith.mulf %315, %301 : vector<8x32xf32>
    %317 = arith.addf %1, %316 : vector<8x32xf32>
    %318 = vector.shape_cast %317 : vector<8x32xf32> to vector<1x8x32xf32>
    %c0_102 = arith.constant 0 : index
    %c0_103 = arith.constant 0 : index
    %c0_104 = arith.constant 0 : index
    %319 = vector.load %arg11[%c0_102, %c0_103, %c0_104] : memref<1x8x32xf32, #tpu.memory_space<vmem>>, vector<1x8x32xf32>
    tpu.vector_store %arg11[%c0_102, %c0_103, %c0_104], %318 {strides = array<i32>} : memref<1x8x32xf32, #tpu.memory_space<vmem>>, vector<1x8x32xf32>,
    return
  }
  func.func @transform_0(%arg0: i32) -> i32 {
    %c0_i32 = arith.constant 0 : i32
    %c0_i32_0 = arith.constant 0 : i32
    return %c0_i32 : i32
  }
  func.func @transform_1(%arg0: i32) -> (i32, i32, i32) {
    %c0_i32 = arith.constant 0 : i32
    %c0_i32_0 = arith.constant 0 : i32
    %c0_i32_1 = arith.constant 0 : i32
    return %arg0, %c0_i32, %c0_i32_0 : i32, i32, i32
  }
  func.func @transform_2(%arg0: i32) -> (i32, i32) {
    %c0_i32 = arith.constant 0 : i32
    %c0_i32_0 = arith.constant 0 : i32
    %c0_i32_1 = arith.constant 0 : i32
    return %c0_i32, %c0_i32_0 : i32, i32
  }
  func.func @transform_3(%arg0: i32) -> (i32, i32) {
    %c0_i32 = arith.constant 0 : i32
    %c0_i32_0 = arith.constant 0 : i32
    %c0_i32_1 = arith.constant 0 : i32
    return %c0_i32, %c0_i32_0 : i32, i32
  }
  func.func @transform_4(%arg0: i32) -> (i32, i32, i32) {
    %c0_i32 = arith.constant 0 : i32
    %c0_i32_0 = arith.constant 0 : i32
    %c0_i32_1 = arith.constant 0 : i32
    %c0_i32_2 = arith.constant 0 : i32
    return %c0_i32, %c0_i32_0, %c0_i32_1 : i32, i32, i32
  }
  func.func @transform_5(%arg0: i32) -> (i32, i32) {
    %c0_i32 = arith.constant 0 : i32
    %c0_i32_0 = arith.constant 0 : i32
    %c0_i32_1 = arith.constant 0 : i32
    return %c0_i32, %c0_i32_0 : i32, i32
  }
  func.func @transform_6(%arg0: i32) -> (i32, i32, i32) {
    %c0_i32 = arith.constant 0 : i32
    %c0_i32_0 = arith.constant 0 : i32
    %c0_i32_1 = arith.constant 0 : i32
    %c0_i32_2 = arith.constant 0 : i32
    return %c0_i32, %c0_i32_0, %c0_i32_1 : i32, i32, i32
  }
  func.func @transform_7(%arg0: i32) -> (i32, i32) {
    %c0_i32 = arith.constant 0 : i32
    %c0_i32_0 = arith.constant 0 : i32
    %c0_i32_1 = arith.constant 0 : i32
    return %c0_i32, %c0_i32_0 : i32, i32
  }
  func.func @transform_8(%arg0: i32) -> (i32, i32) {
    %c0_i32 = arith.constant 0 : i32
    %c0_i32_0 = arith.constant 0 : i32
    %c0_i32_1 = arith.constant 0 : i32
    return %c0_i32, %c0_i32_0 : i32, i32
  }
  func.func @transform_9(%arg0: i32) -> (i32, i32) {
    %c0_i32 = arith.constant 0 : i32
    %c0_i32_0 = arith.constant 0 : i32
    %c0_i32_1 = arith.constant 0 : i32
    return %c0_i32, %c0_i32_0 : i32, i32
  }
  func.func @transform_10(%arg0: i32) -> (i32, i32, i32) {
    %c0_i32 = arith.constant 0 : i32
    %c0_i32_0 = arith.constant 0 : i32
    %c0_i32_1 = arith.constant 0 : i32
    return %arg0, %c0_i32, %c0_i32_0 : i32, i32, i32
  }
}

</mosaic_0001>

<bundles_post_ra>
// kernel: tpu_custom_call.1
= control target key start
LH: loop header
LB: loop body
LE: loop exit
PB: predicated region body
PF: predicated region fallthrough
CT: control target
= control target key end

     0   :  { %s5292_s0 = inlined_call_operand.hbm [shape: f32[2], index: 0, kind: input, shape index: {}]   ;;  %s5293_s1 = inlined_call_operand.hbm [shape: f32[2,8,32], index: 1, kind: input, shape index: {}]   ;;  %s5294_s2 = inlined_call_operand.hbm [shape: f32[32,288], index: 2, kind: input, shape index: {}]   ;;  %s5295_s3 = inlined_call_operand.vmem [shape: f32[1,288], index: 3, kind: input, shape index: {}]   ;;  %s5296_s4 = inlined_call_operand.hbm [shape: f32[3,32,32], index: 4, kind: input, shape index: {}]   ;;  %s5297_s5 = inlined_call_operand.vmem [shape: f32[3,32], index: 5, kind: input, shape index: {}]   ;;  %s5298_s6 = inlined_call_operand.hbm [shape: f32[3,32,32], index: 6, kind: input, shape index: {}]   ;;  %s5299_s7 = inlined_call_operand.vmem [shape: f32[1,32], index: 7, kind: input, shape index: {}]   ;;  %s5300_s8 = inlined_call_operand.vmem [shape: f32[1,32], index: 8, kind: input, shape index: {}]   ;;  %s5301_s9 = inlined_call_operand.<no memory space> [shape: f32[1,1], index: 9, kind: input, shape index: {}]   ;;  %s5302_s10 = inlined_call_operand.hbm [shape: f32[2,8,32], index: 10, kind: output, shape index: {}]  }
   0x1   :  { %5308 = sst [smem:[#allocation19_spill]] %s5292_s0  ;;  %v15_v0 = vstv %s5301_s9 }
   0x2   :  { %5309 = sst [smem:[#allocation20_spill]] %s5294_s2  ;;  %16 = vst [vmem:[#allocation2] sm:$0x1] %v15_v0 }
   0x3   :  { %5310 = sst [smem:[#allocation21_spill]] %s5296_s4 }
   0x4   :  { %5311 = sst [smem:[#allocation22_spill]] %s5298_s6 }
   0x5   :  { %17 = vsyncpa [#allocation6], 0 }
   0x6   :  { %18 = vsyncpa [#allocation4], 0 }
   0x7   :  { %20 = vsyncpa [#allocation4 + $0x1], 0 }
   0x8   :  { %21 = vsyncpa [#allocation9], 0 }
   0x9   :  { %22 = vsyncpa [#allocation12], 0 }
   0xa   :  { %23 = vsyncpa [#allocation5], 0 }
   0xb   :  { %25 = vsyncpa [#allocation5 + $0x1], 0  ;;  %s4743_s15 = smov 0   ;;  %s4745_s16 = smov 0  }
   0xc   :  { %s4747_s17 = smov 0   ;;  %s4749_s18 = smov 0  }
   0xd LB: > { %s4657_s9 = smov [#allocation8]   ;;  %s4764_s20 = sadd.s32 4294967295, %s4655_s18   ;;  %s4655_s18 = sphi %s4749_s18, %s5338_s18   ;;  %s4651_s17 = sphi %s4747_s17, %s5337_s17   ;;  %s4647_s16 = sphi %s4745_s16, %s5336_s16   ;;  %s4643_s15 = sphi %s4743_s15, %s5335_s15  }
   0xe   : > { %s298_s19 = sshll.u32 %s4657_s9, 4  ;;  %p3905_p0 = scmp.ge.s32.totalorder %s4655_s18, 1  ;;  %s299_s19 = int_to_ptr.vmem [resolvable:$true] %s298_s19 }
   0xf   : > { %p5303_p1 = scmp.eq.s32.totalorder %s4764_s20, 0  ;;  %p277_p2 = scmp.lt.s32.totalorder %s4655_s18, 3 }
  0x10   : > { %s4658_s23 = smov [#allocation10]   ;;  %s4473_s25 = scalar_lea.vmem %s299_s19, 1536 }
  0x11   : > { %p4769_p3 = pnand %p3905_p0, %p277_p2  ;;  %s314_s24 = sshll.u32 %s4658_s23, 4  ;;  %s4782_s24 = int_to_ptr.vmem [resolvable:$true] %s314_s24 }
  0x12   : > { %p4474_p8 = scmp.ne.s32.totalorder %s299_s19, %s4473_s25  ;;  %p4481_p11 = scmp.lt.s32.totalorder %s299_s19, %s299_s19 }
  0x13   : > { %s5312_s21 = scalar_select %p4769_p3, 1, 0 }
  0x14   : > { %p4318_p5 = pneg %p4769_p3  ;;  %p4482_p12 = scmp.lt.s32.totalorder %s4473_s25, %s4473_s25 }
  0x16   : > { %p4778_p6 = pnand %p4318_p5, %p5303_p1  ;;  %p4483_p13 = por %p4482_p12, %p4481_p11 }
  0x18   : > { %p4464_p7 = pneg %p4778_p6 }
  0x1a   : > { %p4476_p9 = pnand %p4474_p8, %p4464_p7 }
  0x1c   : > { %p4477_p10 = pneg %p4476_p9 }
  0x1e   : > { %p4484_p0 = pnand %p4483_p13, %p4477_p10 }
  0x20   : > { %4487 = shalt.err (!%p4484_p0)
}
  0x21   : > { %s4659_s26 = smov 384   ;;  %s4660_s27 = smov 24  }
  0x22   : > { %s5314_s2 = sld [smem:[#allocation20_spill]]  ;;  %s4661_s30 = smov [#allocation3]  }
  0x23   : > { %s5315_s0 = sld [smem:[#allocation19_spill]]  ;;  %s4510_s13 = scalar_lea.vmem %s4782_s24, 1536 }
  0x24   : > { %p4511_p2 = scmp.ne.s32.totalorder %s4782_s24, %s4510_s13  ;;  %p4518_p9 = scmp.lt.s32.totalorder %s4782_s24, %s4782_s24 }
  0x25   : > { %p4519_p10 = scmp.lt.s32.totalorder %s4510_s13, %s4510_s13 }
  0x26   : > { %p4513_p5 = pnand %p4511_p2, %p4464_p7 }
  0x27   : > { %p4520_p11 = por %p4519_p10, %p4518_p9 }
  0x28   : > { %4324 = dma.hbm_to_vmem [thread:$0]  (!%p4778_p6), %s5314_s2, 1536, %s299_s19, [#allocation9], %s4659_s26, %s4659_s26, %s4660_s27  }
  0x29   : > { %4321 = dma.hbm_to_smem (!%p4778_p6), %s5315_s0, 16, %s4661_s30, [#allocation6]  }
  0x2a   : > { %p4514_p8 = pneg %p4513_p5 }
  0x2c   : > { %p4521_p12 = pnand %p4520_p11, %p4514_p8 }
  0x2e   : > { %4524 = shalt.err (!%p4521_p12)
}
  0x2f   : > { %s4662_s14 = smov 128   ;;  %s4663_s9 = smov 8  }
  0x30   : > { %s5316_s4 = sld [smem:[#allocation21_spill]]  ;;  %s4664_s25 = smov [#allocation11]  }
  0x31   : > { %s330_s26 = sshll.u32 %s4664_s25, 4  ;;  %s331_s26 = int_to_ptr.vmem [resolvable:$true] %s330_s26 }
  0x32   : > { %s4536_s27 = scalar_lea.vmem %s331_s26, 1536  ;;  %p4544_p5 = scmp.lt.s32.totalorder %s331_s26, %s331_s26 }
  0x33   : > { %p4537_p13 = scmp.ne.s32.totalorder %s331_s26, %s4536_s27  ;;  %p4545_p8 = scmp.lt.s32.totalorder %s4536_s27, %s4536_s27 }
  0x35   : > { %p4539_p0 = pnand %p4537_p13, %p4464_p7  ;;  %p4546_p9 = por %p4545_p8, %p4544_p5 }
  0x36   : > { %4327 = dma.hbm_to_vmem [thread:$0]  (!%p4778_p6), %s5316_s4, 1536, %s4782_s24, [#allocation9], %s4662_s14, %s4662_s14, %s4663_s9  }
  0x37   : > { %p4540_p2 = pneg %p4539_p0 }
  0x39   : > { %p4547_p10 = pnand %p4546_p9, %p4540_p2 }
  0x3b   : > { %4550 = shalt.err (!%p4547_p10)
}
  0x3c   : > { %s5317_s6 = sld [smem:[#allocation22_spill]]  ;;  %s3904_s24 = sadd.s32 4294967294, %s4655_s18  }
  0x3d   : > { %s4822_s22 = sadd.s32 1, %s4655_s18   ;;  %s59_s11 = sadd.s32 1, %s4651_s17 }
  0x3e   : > { %s56_s30 = ssub.s32 %s4655_s18, %s4822_s22  ;;  %p66_p11 = scmp.ne.s32.totalorder %s4651_s17, %s4647_s16 }
  0x3f   : > { %p57_p7 = scmp.eq.s32.totalorder %s56_s30, 0  ;;  %p67_p12 = scmp.eq.s32.totalorder %s4655_s18, 0 }
  0x40   : > { %p72_p13 = scmp.ne.s32.totalorder %s4647_s16, %s4643_s15  ;;  %p264_p2 = scmp.eq.s32.totalorder %s4764_s20, 1 }
  0x41   : > { %s4833_s12 = scalar_select %p57_p7, %s4651_s17, %s59_s11  }
  0x42   : > { %4330 = dma.hbm_to_vmem [thread:$0]  (!%p4778_p6), %s5317_s6, 1536, %s331_s26, [#allocation12], %s4662_s14, %s4662_s14, %s4663_s9  }
  0x43   : > { %p4835_p0 = por %p67_p12, %p66_p11  ;;  %p4841_p6 = por %p5303_p1, %p72_p13 }
  0x44   : > { %p270_p5 = scmp.eq.s32.totalorder %s3904_s24, 1  ;;  %p4343_p8 = scmp.lt.s32.totalorder %s4655_s18, 2 }
  0x45   : > { %s5319_s14 = scalar_select %p4841_p6, 1, 0 }
  0x46   : > { %s353_s9 = sand.u32 1, %s4651_s17   ;;  %p4848_p9 = por %p264_p2, %p66_p11 }
  0x47   : > { %p4852_p10 = por %p270_p5, %p72_p13  ;;  %s3911_s25 = sshll.u32 %s353_s9, 3 }
  0x48   : > { %s5320_s19 = scalar_select %p4848_p9, 1, 0 }
  0x49   : > { %s5321_s23 = scalar_select %p4852_p10, 1, 0 }
  0x4a   : > { %s3912_s26 = sshll.u32 %s4655_s18, 7  ;;  %s357_s24 = scalar_lea.vmem [#allocation7], %s3911_s25 }
  0x4b   : > { %s4860_s29 = scalar_lea.hbm %s5293_s1, %s3912_s26  ;;  %s364_s30 = sshll.u32 %s357_s24, 4  ;;  %s365_s30 = int_to_ptr.vmem [resolvable:$true] %s364_s30 }
  0x4c   : > { %p4864_p7 = pnand %p4343_p8, %p4835_p0  ;;  %s354_s0 = scalar_lea.sflag [#allocation4], %s353_s9 }
  0x4d   : > { %s4551_s2 = scalar_lea.hbm %s4860_s29, 128  ;;  %s4556_s28 = scalar_lea.hbm %s5293_s1, 256 }
  0x4e   : > { %p4552_p11 = scmp.ne.s32.totalorder %s4860_s29, %s4551_s2  ;;  %p4553_p12 = pneg %p4864_p7 }
  0x4f   : > { %p4557_p5 = scmp.lt.s32.totalorder %s4860_s29, %s5293_s1  ;;  %p4558_p0 = scmp.lt.s32.totalorder %s4556_s28, %s4551_s2 }
  0x50   : > { %p4554_p13 = pnand %p4553_p12, %p4552_p11 }
  0x51   : > { %p4559_p8 = por %p4558_p0, %p4557_p5 }
  0x52   : > { %p4555_p2 = pneg %p4554_p13 }
  0x54   : > { %p4560_p4 = pnand %p4559_p8, %p4555_p2 }
  0x56   : > { %4563 = shalt.err (!%p4560_p4)
}
  0x57   : > { %s4564_s13 = scalar_lea.vmem %s365_s30, 128  ;;  %s4665_s9 = smov [#allocation7]  }
  0x58   : > { %p4565_p1 = scmp.ne.s32.totalorder %s365_s30, %s4564_s13  ;;  %s4569_s4 = sshll.u32 %s4665_s9, 4  ;;  %s4570_s4 = int_to_ptr.vmem [resolvable:$false] %s4569_s4 }
  0x59   : > { %s4571_s6 = scalar_lea.vmem %s4570_s4, 256  ;;  %p4572_p11 = scmp.lt.s32.totalorder %s365_s30, %s4570_s4 }
  0x5a   : > { %p4567_p10 = pnand %p4565_p1, %p4553_p12  ;;  %p4573_p13 = scmp.lt.s32.totalorder %s4571_s6, %s4564_s13 }
  0x5c   : > { %p4568_p9 = pneg %p4567_p10  ;;  %p4574_p6 = por %p4573_p13, %p4572_p11 }
  0x5e   : > { %p4575_p3 = pnand %p4574_p6, %p4568_p9 }
  0x60   : > { %4578 = shalt.err (!%p4575_p3)
}
  0x61   : > { %4334 = dma.hbm_to_vmem [thread:$0]  (!%p4864_p7), %s4860_s29, 128, %s365_s30, %s354_s0  }
  0x62   : > { %p5323_p2 = scmp.ne.s32.totalorder %s5312_s21, 0 }
  0x63   : > { %p5324_p4 = scmp.eq.s32.totalorder (!%p5323_p2), %s4764_s20, 0 }
  0x64   : > { %373 = sbr.rel (%p5323_p2) target bundleno = 6905 (0x1af9), region = 60 }
  0x69   : > { %4622 = dma.done.wait (%p5324_p4), [#allocation6], 16   ;;  %p5325_p1 = pmov %p5324_p4 }
  0x6a   : > { %s4889_s2 = sand.u32 1, %s4647_s16   ;;  %p5326_p3 = scmp.ne.s32.totalorder %s5319_s14, 0 }
  0x6b   : > { %4624 = vsyncadd (%p5325_p1), [#allocation6], 4294967280  ;;  %s5307_s4 = sshll.u32 %s4889_s2, 3  ;;  %s380_s6 = scalar_lea.sflag [#allocation4], %s4889_s2 }
  0x6c   : > { %s4895_s0 = scalar_lea.vmem [#allocation7], %s5307_s4 }
  0x6d   : > { %4626 = dma.done.wait (%p5326_p3), %s380_s6, 128  }
  0x6e   : > { %4628 = vsyncadd (%p5326_p3), %s380_s6, 4294967168  ;;  %p5327_p6 = pmov %p5325_p1 }
  0x6f   : > { %p5328_p9 = pmov %p5325_p1 }
  0x70   : > { %4630 = dma.done.wait (%p5327_p6), [#allocation9], 3072  }
  0x71   : > { %4632 = vsyncadd (%p5328_p9), [#allocation9], 4294964224  ;;  %p5329_p10 = pmov %p5325_p1 }
  0x72   : > { %p5330_p7 = pmov %p5325_p1 }
  0x73   : > { %4634 = dma.done.wait (%p5329_p10), [#allocation12], 1536  }
  0x74   : > { %4636 = vsyncadd (%p5330_p7), [#allocation12], 4294965760 }
  0x75   : > { %400 = sfence }
  0x76   : > { %v446_v1 = vld [vmem:[#allocation8 + $0x50] sm:$0xff]  ;;  %v445_v2 = vld [vmem:[#allocation8 + $0x48] sm:$0xff]  ;;  %v443_v3 = vld [vmem:[#allocation8 + $0x38] sm:$0xff]  ;;  %v4666_v5 = vmov 0.0   ;;  %vm465_vm0 = vcmask 261120   ;;  %vm4667_vm1 = vmmov 0   ;;  %v450_v15 = vlaneseq }
  0x77   : > { %493 = vmatprep.subr.mxu0 %v446_v1  ;;  %v442_v4 = vld [vmem:[#allocation8 + $0x30] sm:$0xff]  ;;  %533 = vmatprep.mubr.f32.mxu0 %v4666_v5  ;;  %v440_v6 = vld [vmem:[#allocation8 + $0x20] sm:$0xff]  ;;  %v439_v7 = vld [vmem:[#allocation8 + $0x18] sm:$0xff]  ;;  %s4668_s29 = smov 120   ;;  %s4669_s30 = smov 96   ;;  %vm618_vm2 = vcmask 64512  }
  0x78   : > { %494 = vmatpush1.msra.mxu0 %v445_v2  ;;  %4074 = vmatprep.subr.mxu1 %v4666_v5  ;;  %v437_v8 = vld [vmem:[#allocation8 + $0x8] sm:$0xff]  ;;  %v436_v9 = vld [vmem:[#allocation8] sm:$0xff]  ;;  %v433_v10 = vld [vmem:[%s4895_s0] sm:$0xff]  ;;  %v4925_v16 = vshrl.u32 %v450_v15, 7  ;;  %s4670_s11 = smov 88   ;;  %s4671_s26 = smov 56  }
  0x79   : > { %495 = vmatprep.subr.mxu0 %v443_v3  ;;  %v447_v11 = vld [vmem:[#allocation8 + $0x58] sm:$0xff]  ;;  %v444_v12 = vld [vmem:[#allocation8 + $0x40] sm:$0xff]  ;;  %4082 = vmatprep.mubr.msk.f32.mxu1 %vm4667_vm1, %v4666_v5  ;;  %v441_v13 = vld [vmem:[#allocation8 + $0x28] sm:$0xff]  ;;  %s4672_s27 = smov 64   ;;  %s4673_s28 = smov 80  }
  0x7a   : > { %496 = vmatpush1.msra.mxu0 %v442_v4  ;;  %4075 = vmatpush3.msra.mxu1 %v447_v11  ;;  %v438_v14 = vld [vmem:[#allocation8 + $0x10] sm:$0xff]  ;;  %v452_v17 = vsub.s32 0, %v4925_v16  ;;  %s4674_s25 = smov 112   ;;  %v611_v52 = vld [vmem:[#allocation10] sm:$0xff]  ;;  %v612_v53 = vld [vmem:[#allocation10 + $0x8] sm:$0xff]  ;;  %s4675_s24 = smov 72  }
  0x7b   : > { %497 = vmatprep.subr.mxu0 %v440_v6  ;;  %4076 = vmatprep.subr.mxu1 %v4666_v5  ;;  %v4931_v18 = vld [vmem:[%s5295_s3] sm:$0x7]  ;;  %s4676_s13 = smov 104   ;;  %s4677_s9 = smov 32  }
  0x7c   : > { %498 = vmatpush1.msra.mxu0 %v439_v7  ;;  %4077 = vmatpush3.msra.mxu1 %v444_v12  ;;  %v453_v19 = vrot.slane %v4931_v18, %v452_v17  ;;  %s4678_s6 = smov 48   ;;  %s4679_s21 = smov 40  }
  0x7d   : > { %499 = vmatprep.subr.mxu0 %v437_v8  ;;  %4078 = vmatprep.subr.mxu1 %v4666_v5  ;;  %s4680_s14 = smov 24   ;;  %s4681_s4 = smov 16  }
  0x7e   : > { %500 = vmatpush1.msra.mxu0 %v436_v9  ;;  %4079 = vmatpush3.msra.mxu1 %v441_v13  ;;  %p5332_p5 = scmp.ne.s32.totalorder %s5320_s19, 0 }
  0x7f   : > { %3921 = vmatmul.mubr.msk.f32.vlgmr.msra.gmra.mxu0 %vm465_vm0, %v433_v10  ;;  %4095 = vmatprep.subr.mxu0 %v4666_v5 }
  0x80   : > { %4097 = vmatprep.mubr.msk.f32.mxu0 %vm4667_vm1, %v4666_v5  ;;  %4080 = vmatprep.subr.mxu1 %v4666_v5 }
  0x81   : > { %4081 = vmatpush3.msra.mxu1 %v438_v14 }
  0x82   : > { %4083 = vmatmul.mubr.msk.f32.vlgmr.msra.gmra.mxu1 %vm465_vm0, %v433_v10  ;;  %4085 = vmatprep.subr.mxu1 %v4666_v5 }
  0x83   : > { %4087 = vmatprep.mubr.msk.f32.mxu1 %vm4667_vm1, %v4666_v5 }
 0x13f   : > { %v535_v20 = vpop.f32.mrf.mxu0 }
 0x140   : > { %v4936_v21 = vadd.f32 %v535_v20, %v453_v19  ;;  %v613_v19 = vld [vmem:[#allocation10 + $0x10] sm:$0xff] }
 0x141   : > { %v4958_v29 = vpop.f32.mrf.mxu0 }
 0x142   : > { %780 = vrot.lane.b32.xlu1 %v4936_v21, %s4668_s29  ;;  %616 = vrot.lane.b32.xlu0 %v4936_v21, %s4669_s30  ;;  %v4944_v22 = vpop.f32.mrf.mxu1 }
 0x144   : > { %v4084_v23 = vpop.f32.mrf.mxu1 }
 0x146   : > { %782 = vrot.lane.b32.xlu0 %v4936_v21, %s4670_s11 }
 0x1b4   : > { %v617_v24 = vpop.permute.xlu0 %616  ;;  %v781_v26 = vpop.permute.xlu1 %780 }
 0x1b5   : > { %4086 = vmatpush3.xpose.msk.msra.mxu1 %vm618_vm2, %v617_v24 }
 0x1b6   : > { %4090 = vmatprep.subr.mxu1 %v4666_v5 }
 0x1b8   : > { %4088 = vmatmul.mubr.msk.f32.vlgmr.msra.gmra.mxu1 %vm618_vm2, %v4936_v21  ;;  %v783_v25 = vpop.permute.xlu0 %782 }
 0x1b9   : > { %4096 = vmatpush3.xpose.msk.msra.mxu0 %vm618_vm2, %v783_v25  ;;  %4092 = vmatprep.mubr.msk.f32.mxu1 %vm4667_vm1, %v4666_v5 }
 0x1ba   : > { %4105 = vmatprep.subr.mxu0 %v4666_v5 }
 0x1bc   : > { %4098 = vmatmul.mubr.msk.f32.vlgmr.msra.gmra.mxu0 %vm618_vm2, %v781_v26 }
 0x1bd   : > { %4107 = vmatprep.mubr.msk.f32.mxu0 %vm4667_vm1, %v4666_v5  ;;  %4106 = vmatpush3.msra.mxu0 %v612_v53 }
 0x1be   : > { %4115 = vmatprep.subr.mxu0 %v4666_v5 }
 0x278   : > { %v689_v27 = vpop.f32.mrf.mxu1 }
 0x279   : > { %v693_v28 = vsel %vm618_vm2, %v689_v27, -inf }
 0x27a   : > { %694 = vmax.xlane.f32.xlu1 %v693_v28  ;;  %v4089_v30 = vpop.f32.mrf.mxu1 }
 0x27c   : > { %v854_v31 = vpop.f32.mrf.mxu0 }
 0x27d   : > { %v858_v32 = vsel %vm618_vm2, %v854_v31, -inf }
 0x27e   : > { %859 = vmax.xlane.f32.xlu0 %v858_v32  ;;  %v4099_v33 = vpop.f32.mrf.mxu0 }
 0x303   : > { %v695_v34 = vpop.xlane.xlu1 %694 }
 0x304   : > { %v696_v35 = vsub.f32 %v689_v27, %v695_v34  ;;  %v456_v27 = vsub.s32 1, %v4925_v16 }
 0x306   : > { %v697_v36 = vmul.f32 1.442695, %v696_v35  ;;  %v457_v28 = vrot.slane %v4931_v18, %v456_v27 }
 0x307   : > { %v860_v37 = vpop.xlane.xlu0 %859 }
 0x308   : > { %4409 = vpow2.f32 %v697_v36  ;;  %v861_v38 = vsub.f32 %v854_v31, %v860_v37  ;;  %v5025_v30 = vadd.f32 %v4958_v29, %v457_v28 }
 0x30a   : > { %v862_v39 = vmul.f32 1.442695, %v861_v38 }
 0x30c   : > { %4411 = vpow2.f32 %v862_v39 }
 0x315   : > { %v4410_v40 = vpop.eup %4409 }
 0x316   : > { %v699_v41 = vsel %vm618_vm2, %v4410_v40, 0.0 }
 0x317   : > { %700 = vadd.xlane.f32.xlu0 %v699_v41 }
 0x319   : > { %v4412_v42 = vpop.eup %4411 }
 0x31a   : > { %v864_v43 = vsel %vm618_vm2, %v4412_v42, 0.0 }
 0x31b   : > { %865 = vadd.xlane.f32.xlu1 %v864_v43 }
 0x32c   : > { %869 = vrot.lane.b32.xlu1 %v4936_v21, %s4671_s26 }
 0x32d   : > { %704 = vrot.lane.b32.xlu0 %v4936_v21, %s4672_s27 }
 0x330   : > { %1093 = vrot.lane.b32.xlu1 %v4936_v21, %s4673_s28 }
 0x331   : > { %1091 = vrot.lane.b32.xlu0 %v4936_v21, %s4674_s25 }
 0x3a0   : > { %v701_v44 = vpop.xlane.xlu0 %700 }
 0x3a1   : > { %4413 = vrcp.f32 %v701_v44 }
 0x3a4   : > { %v866_v45 = vpop.xlane.xlu1 %865  ;;  %v705_v46 = vpop.permute.xlu0 %704 }
 0x3a5   : > { %4415 = vrcp.f32 %v866_v45  ;;  %4091 = vmatpush3.msra.mxu1 %v705_v46  ;;  %v614_v45 = vld [vmem:[#allocation10 + $0x18] sm:$0xff] }
 0x3a6   : > { %4100 = vmatprep.subr.mxu1 %v4666_v5 }
 0x3a8   : > { %v870_v49 = vpop.permute.xlu1 %869  ;;  %v1092_v59 = vpop.permute.xlu0 %1091 }
 0x3ac   : > { %v1094_v57 = vpop.permute.xlu1 %1093 }
 0x3ae   : > { %v4414_v47 = vpop.eup %4413 }
 0x3af   : > { %v703_v48 = vmul.f32 %v4414_v47, %v4410_v40 }
 0x3b1   : > { %4093 = vmatmul.mubr.msk.f32.vlgmr.msra.gmra.mxu1 %vm618_vm2, %v703_v48 }
 0x3b2   : > { %v4416_v50 = vpop.eup %4415  ;;  %4101 = vmatpush3.msra.mxu1 %v870_v49  ;;  %4102 = vmatprep.mubr.msk.f32.mxu1 %vm4667_vm1, %v4666_v5 }
 0x3b3   : > { %v868_v51 = vmul.f32 %v4416_v50, %v4412_v42  ;;  %4110 = vmatprep.subr.mxu1 %v4666_v5 }
 0x3b5   : > { %4103 = vmatmul.mubr.msk.f32.vlgmr.msra.gmra.mxu1 %vm618_vm2, %v868_v51 }
 0x3b6   : > { %4112 = vmatprep.mubr.msk.f32.mxu1 %vm4667_vm1, %v4666_v5  ;;  %4111 = vmatpush3.msra.mxu1 %v611_v52 }
 0x3b7   : > { %4120 = vmatprep.subr.mxu1 %v4666_v5 }
 0x471   : > { %v776_v54 = vpop.f32.mrf.mxu1 }
 0x472   : > { %4113 = vmatmul.mubr.msk.f32.vlgmr.msra.gmra.mxu1 %vm618_vm2, %v776_v54 }
 0x473   : > { %v4094_v55 = vpop.f32.mrf.mxu1  ;;  %4122 = vmatprep.mubr.msk.f32.mxu1 %vm4667_vm1, %v4666_v5 }
 0x475   : > { %v941_v56 = vpop.f32.mrf.mxu1 }
 0x476   : > { %4108 = vmatmul.mubr.msk.f32.vlgmr.msra.gmra.mxu0 %vm618_vm2, %v941_v56 }
 0x477   : > { %4116 = vmatpush3.xpose.msk.msra.mxu0 %vm618_vm2, %v1094_v57  ;;  %v4104_v58 = vpop.f32.mrf.mxu1  ;;  %4117 = vmatprep.mubr.msk.f32.mxu0 %vm4667_vm1, %v4666_v5 }
 0x478   : > { %4125 = vmatprep.subr.mxu0 %v4666_v5 }
 0x47a   : > { %4118 = vmatmul.mubr.msk.f32.vlgmr.msra.gmra.mxu0 %vm618_vm2, %v1092_v59 }
 0x47b   : > { %4127 = vmatprep.mubr.msk.f32.mxu0 %vm4667_vm1, %v4666_v5  ;;  %4126 = vmatpush3.msra.mxu0 %v613_v19 }
 0x47c   : > { %4135 = vmatprep.subr.mxu0 %v4666_v5 }
 0x532   : > { %v1087_v60 = vpop.f32.mrf.mxu1 }
 0x534   : > { %v4114_v61 = vpop.f32.mrf.mxu1 }
 0x536   : > { %v1014_v62 = vpop.f32.mrf.mxu0 }
 0x537   : > { %v4992_v63 = vadd.f32 %v1087_v60, %v1014_v62 }
 0x538   : > { %v4109_v0 = vpop.f32.mrf.mxu0 }
 0x53a   : > { %v1165_v1 = vpop.f32.mrf.mxu0 }
 0x53b   : > { %v1169_v2 = vsel %vm618_vm2, %v1165_v1, -inf }
 0x53c   : > { %1170 = vmax.xlane.f32.xlu1 %v1169_v2  ;;  %v4119_v3 = vpop.f32.mrf.mxu0 }
 0x54d   : > { %1332 = vrot.lane.b32.xlu1 %v4936_v21, %s4675_s24 }
 0x551   : > { %1330 = vrot.lane.b32.xlu1 %v4936_v21, %s4676_s13 }
 0x555   : > { %1585 = vrot.lane.b32.xlu1 %v4936_v21, %s4677_s9 }
 0x5c5   : > { %v1171_v4 = vpop.xlane.xlu1 %1170 }
 0x5c6   : > { %v1172_v6 = vsub.f32 %v1165_v1, %v1171_v4 }
 0x5c8   : > { %v1173_v7 = vmul.f32 1.442695, %v1172_v6 }
 0x5c9   : > { %v1333_v13 = vpop.permute.xlu1 %1332 }
 0x5ca   : > { %4417 = vpow2.f32 %v1173_v7 }
 0x5cd   : > { %v1331_v15 = vpop.permute.xlu1 %1330 }
 0x5d1   : > { %v1586_v39 = vpop.permute.xlu1 %1585 }
 0x5d7   : > { %v4418_v8 = vpop.eup %4417 }
 0x5d8   : > { %v1175_v9 = vsel %vm618_vm2, %v4418_v8, 0.0 }
 0x5d9   : > { %1176 = vadd.xlane.f32.xlu0 %v1175_v9 }
 0x5ef   : > { %1180 = vrot.lane.b32.xlu0 %v4936_v21, %s4678_s6 }
 0x662   : > { %v1177_v10 = vpop.xlane.xlu0 %1176 }
 0x663   : > { %4419 = vrcp.f32 %v1177_v10 }
 0x666   : > { %v1181_v11 = vpop.permute.xlu0 %1180 }
 0x667   : > { %4121 = vmatpush3.msra.mxu1 %v1181_v11 }
 0x668   : > { %4130 = vmatprep.subr.mxu1 %v4666_v5 }
 0x670   : > { %v4420_v12 = vpop.eup %4419 }
 0x671   : > { %v1179_v14 = vmul.f32 %v4420_v12, %v4418_v8  ;;  %v1581_v12 = vld [vmem:[#allocation10 + $0x20] sm:$0xff] }
 0x673   : > { %4123 = vmatmul.mubr.msk.f32.vlgmr.msra.gmra.mxu1 %vm618_vm2, %v1179_v14 }
 0x674   : > { %4131 = vmatpush3.xpose.msk.msra.mxu1 %vm618_vm2, %v1333_v13  ;;  %4132 = vmatprep.mubr.msk.f32.mxu1 %vm4667_vm1, %v4666_v5  ;;  %v1582_v13 = vld [vmem:[#allocation10 + $0x28] sm:$0xff] }
 0x675   : > { %4140 = vmatprep.subr.mxu1 %v4666_v5 }
 0x677   : > { %4133 = vmatmul.mubr.msk.f32.vlgmr.msra.gmra.mxu1 %vm618_vm2, %v1331_v15 }
 0x678   : > { %4142 = vmatprep.mubr.msk.f32.mxu1 %vm4667_vm1, %v4666_v5  ;;  %4141 = vmatpush3.msra.mxu1 %v614_v45  ;;  %v1583_v45 = vld [vmem:[#allocation10 + $0x30] sm:$0xff] }
 0x679   : > { %4150 = vmatprep.subr.mxu1 %v4666_v5 }
 0x733   : > { %v1252_v20 = vpop.f32.mrf.mxu1 }
 0x734   : > { %4128 = vmatmul.mubr.msk.f32.vlgmr.msra.gmra.mxu0 %vm618_vm2, %v1252_v20 }
 0x735   : > { %v4124_v23 = vpop.f32.mrf.mxu1  ;;  %4137 = vmatprep.mubr.msk.f32.mxu0 %vm4667_vm1, %v4666_v5 }
 0x737   : > { %v1404_v24 = vpop.f32.mrf.mxu1 }
 0x738   : > { %v1408_v25 = vsel %vm618_vm2, %v1404_v24, -inf }
 0x739   : > { %1409 = vmax.xlane.f32.xlu0 %v1408_v25  ;;  %v4134_v26 = vpop.f32.mrf.mxu1 }
 0x74f   : > { %1419 = vrot.lane.b32.xlu0 %v4936_v21, %s4679_s21 }
 0x753   : > { %1751 = vrot.lane.b32.xlu0 %v5025_v30, %s4668_s29 }
 0x7c2   : > { %v1410_v31 = vpop.xlane.xlu0 %1409 }
 0x7c3   : > { %v1411_v32 = vsub.f32 %v1404_v24, %v1410_v31 }
 0x7c5   : > { %v1412_v33 = vmul.f32 1.442695, %v1411_v32 }
 0x7c6   : > { %v1420_v34 = vpop.permute.xlu0 %1419 }
 0x7c7   : > { %4421 = vpow2.f32 %v1412_v33  ;;  %4136 = vmatpush3.msra.mxu0 %v1420_v34 }
 0x7c8   : > { %4145 = vmatprep.subr.mxu0 %v4666_v5 }
 0x7ca   : > { %v1752_v43 = vpop.permute.xlu0 %1751 }
 0x7d4   : > { %v4422_v35 = vpop.eup %4421 }
 0x7d5   : > { %v1414_v36 = vsel %vm618_vm2, %v4422_v35, 0.0 }
 0x7d6   : > { %1415 = vadd.xlane.f32.xlu1 %v1414_v36 }
 0x7e7   : > { %1749 = vrot.lane.b32.xlu1 %v4936_v21, %s4680_s14 }
 0x7f4   : > { %v1325_v29 = vpop.f32.mrf.mxu0 }
 0x7f5   : > { %v1329_v37 = vadd.f32 %v1325_v29, %v4992_v63 }
 0x7f6   : > { %v4129_v38 = vpop.f32.mrf.mxu0 }
 0x85f   : > { %v1416_v40 = vpop.xlane.xlu1 %1415 }
 0x860   : > { %4423 = vrcp.f32 %v1416_v40 }
 0x863   : > { %v1750_v44 = vpop.permute.xlu1 %1749 }
 0x86d   : > { %v4424_v41 = vpop.eup %4423 }
 0x86e   : > { %v1418_v42 = vmul.f32 %v4424_v41, %v4422_v35 }
 0x870   : > { %4138 = vmatmul.mubr.msk.f32.vlgmr.msra.gmra.mxu0 %vm618_vm2, %v1418_v42 }
 0x871   : > { %4146 = vmatpush3.xpose.msk.msra.mxu0 %vm618_vm2, %v5025_v30  ;;  %4147 = vmatprep.mubr.msk.f32.mxu0 %vm4667_vm1, %v4666_v5 }
 0x872   : > { %4155 = vmatprep.subr.mxu0 %v4666_v5 }
 0x874   : > { %4148 = vmatmul.mubr.msk.f32.vlgmr.msra.gmra.mxu0 %vm618_vm2, %v1586_v39 }
 0x875   : > { %4156 = vmatpush3.xpose.msk.msra.mxu0 %vm618_vm2, %v1752_v43  ;;  %4157 = vmatprep.mubr.msk.f32.mxu0 %vm4667_vm1, %v4666_v5 }
 0x876   : > { %4165 = vmatprep.subr.mxu0 %v4666_v5 }
 0x878   : > { %4158 = vmatmul.mubr.msk.f32.vlgmr.msra.gmra.mxu0 %vm618_vm2, %v1750_v44 }
 0x879   : > { %4167 = vmatprep.mubr.msk.f32.mxu0 %vm4667_vm1, %v4666_v5  ;;  %4166 = vmatpush3.msra.mxu0 %v1582_v13  ;;  %v1576_v13 = vld [vmem:[#allocation11] sm:$0xff] }
 0x87a   : > { %4175 = vmatprep.subr.mxu0 %v4666_v5 }
 0x930   : > { %v1491_v46 = vpop.f32.mrf.mxu0 }
 0x931   : > { %4143 = vmatmul.mubr.msk.f32.vlgmr.msra.gmra.mxu1 %vm618_vm2, %v1491_v46 }
 0x932   : > { %v4139_v47 = vpop.f32.mrf.mxu0  ;;  %4152 = vmatprep.mubr.msk.f32.mxu1 %vm4667_vm1, %v4666_v5 }
 0x934   : > { %v1658_v48 = vpop.f32.mrf.mxu0 }
 0x935   : > { %v1662_v49 = vsel %vm618_vm2, %v1658_v48, -inf }
 0x936   : > { %1663 = vmax.xlane.f32.xlu0 %v1662_v49  ;;  %v4149_v50 = vpop.f32.mrf.mxu0 }
 0x938   : > { %v1823_v51 = vpop.f32.mrf.mxu0 }
 0x939   : > { %v1827_v52 = vsel %vm618_vm2, %v1823_v51, -inf }
 0x93a   : > { %1828 = vmax.xlane.f32.xlu1 %v1827_v52  ;;  %v4159_v53 = vpop.f32.mrf.mxu0 }
 0x94b   : > { %1673 = vrot.lane.b32.xlu1 %v5025_v30, %s4669_s30  ;;  %s4682_s30 = smov 8  }
 0x94f   : > { %2062 = vrot.lane.b32.xlu1 %v5025_v30, %s4674_s25 }
 0x953   : > { %2060 = vrot.lane.b32.xlu1 %v4936_v21, %s4681_s4 }
 0x9bf   : > { %v1664_v54 = vpop.xlane.xlu0 %1663 }
 0x9c0   : > { %v1665_v55 = vsub.f32 %v1658_v48, %v1664_v54 }
 0x9c2   : > { %v1666_v56 = vmul.f32 1.442695, %v1665_v55 }
 0x9c3   : > { %v1829_v57 = vpop.xlane.xlu1 %1828 }
 0x9c4   : > { %4425 = vpow2.f32 %v1666_v56  ;;  %v1830_v58 = vsub.f32 %v1823_v51, %v1829_v57  ;;  %v1584_v56 = vld [vmem:[#allocation10 + $0x38] sm:$0xff] }
 0x9c6   : > { %v1831_v59 = vmul.f32 1.442695, %v1830_v58 }
 0x9c7   : > { %v1674_v60 = vpop.permute.xlu1 %1673 }
 0x9c8   : > { %4427 = vpow2.f32 %v1831_v59  ;;  %4151 = vmatpush3.msra.mxu1 %v1674_v60 }
 0x9c9   : > { %4160 = vmatprep.subr.mxu1 %v4666_v5 }
 0x9cb   : > { %v2063_v15 = vpop.permute.xlu1 %2062 }
 0x9cf   : > { %v2061_v24 = vpop.permute.xlu1 %2060 }
 0x9d1   : > { %v4426_v61 = vpop.eup %4425 }
 0x9d2   : > { %v1668_v62 = vsel %vm618_vm2, %v4426_v61, 0.0 }
 0x9d3   : > { %1669 = vadd.xlane.f32.xlu0 %v1668_v62 }
 0x9d5   : > { %v4428_v63 = vpop.eup %4427 }
 0x9d6   : > { %v1833_v0 = vsel %vm618_vm2, %v4428_v63, 0.0 }
 0x9d7   : > { %1834 = vadd.xlane.f32.xlu0 %v1833_v0  ;;  %v2548_v0 = vld [vmem:[#allocation11 + $0x38] sm:$0xff] }
 0x9ed   : > { %1838 = vrot.lane.b32.xlu0 %v5025_v30, %s4670_s11  ;;  %s434_s11 = sld [smem:[#allocation3]] }
 0x9f1   : > { %v1564_v1 = vpop.f32.mrf.mxu1 }
 0x9f2   : > { %v5065_v2 = vadd.f32 %v1564_v1, %v1329_v37  ;;  %v5129_v1 = vld [vmem:[%s5297_s5] sm:$0x7] }
 0x9f3   : > { %v4144_v3 = vpop.f32.mrf.mxu1 }
 0x9f4   : > { %v1572_v3 = vrot.slane %v5129_v1, %v452_v17 }
 0xa5c   : > { %v1670_v4 = vpop.xlane.xlu0 %1669 }
 0xa5d   : > { %4429 = vrcp.f32 %v1670_v4  ;;  %v1579_v4 = vld [vmem:[#allocation11 + $0x18] sm:$0xff] }
 0xa60   : > { %v1835_v6 = vpop.xlane.xlu0 %1834 }
 0xa61   : > { %4431 = vrcp.f32 %v1835_v6  ;;  %v460_v6 = vsub.s32 2, %v4925_v16 }
 0xa63   : > { %v461_v17 = vrot.slane %v4931_v18, %v460_v6  ;;  %v2547_v18 = vld [vmem:[#allocation11 + $0x30] sm:$0xff] }
 0xa64   : > { %v1839_v9 = vpop.permute.xlu0 %1838 }
 0xa6a   : > { %v4430_v7 = vpop.eup %4429 }
 0xa6b   : > { %v1672_v8 = vmul.f32 %v4430_v7, %v4426_v61 }
 0xa6d   : > { %4153 = vmatmul.mubr.msk.f32.vlgmr.msra.gmra.mxu1 %vm618_vm2, %v1672_v8  ;;  %v1578_v8 = vld [vmem:[#allocation11 + $0x10] sm:$0xff] }
 0xa6e   : > { %v4432_v10 = vpop.eup %4431  ;;  %4161 = vmatpush3.msra.mxu1 %v1839_v9  ;;  %4162 = vmatprep.mubr.msk.f32.mxu1 %vm4667_vm1, %v4666_v5 }
 0xa6f   : > { %v1837_v11 = vmul.f32 %v4432_v10, %v4428_v63  ;;  %4170 = vmatprep.subr.mxu1 %v4666_v5  ;;  %v1573_v10 = vadd.f32 %v1572_v3, %v5065_v2  ;;  %v2546_v2 = vld [vmem:[#allocation11 + $0x28] sm:$0xff] }
 0xa71   : > { %4163 = vmatmul.mubr.msk.f32.vlgmr.msra.gmra.mxu1 %vm618_vm2, %v1837_v11  ;;  %v1577_v11 = vld [vmem:[#allocation11 + $0x8] sm:$0xff] }
 0xa72   : > { %4172 = vmatprep.mubr.msk.f32.mxu1 %vm4667_vm1, %v4666_v5  ;;  %4171 = vmatpush3.msra.mxu1 %v1581_v12  ;;  %v1574_v12 = vstv %s434_s11 }
 0xa73   : > { %4180 = vmatprep.subr.mxu1 %v4666_v5 }
 0xb2d   : > { %v1745_v14 = vpop.f32.mrf.mxu1 }
 0xb2e   : > { %4173 = vmatmul.mubr.msk.f32.vlgmr.msra.gmra.mxu1 %vm618_vm2, %v1745_v14  ;;  %v1575_v14 = vmul.f32 %v1574_v12, %v1573_v10 }
 0xb2f   : > { %v4154_v19 = vpop.f32.mrf.mxu1  ;;  %4182 = vmatprep.mubr.msk.f32.mxu1 %vm4667_vm1, %v4666_v5 }
 0xb30   : > { %v2541_v19 = vrot.slane %v5129_v1, %v456_v27 }
 0xb31   : > { %v1910_v20 = vpop.f32.mrf.mxu1 }
 0xb32   : > { %4168 = vmatmul.mubr.msk.f32.vlgmr.msra.gmra.mxu0 %vm618_vm2, %v1910_v20 }
 0xb33   : > { %4176 = vmatpush3.xpose.msk.msra.mxu0 %vm618_vm2, %v2063_v15  ;;  %v4164_v23 = vpop.f32.mrf.mxu1  ;;  %4177 = vmatprep.mubr.msk.f32.mxu0 %vm4667_vm1, %v4666_v5  ;;  %v5146_v15 = vadd.f32 %v4944_v22, %v461_v17  ;;  %v2545_v22 = vld [vmem:[#allocation11 + $0x20] sm:$0xff] }
 0xb34   : > { %4185 = vmatprep.subr.mxu0 %v4666_v5 }
 0xb36   : > { %4178 = vmatmul.mubr.msk.f32.vlgmr.msra.gmra.mxu0 %vm618_vm2, %v2061_v24 }
 0xb37   : > { %4187 = vmatprep.mubr.msk.f32.mxu0 %vm4667_vm1, %v4666_v5  ;;  %4186 = vmatpush3.msra.mxu0 %v1583_v45 }
 0xb38   : > { %4195 = vmatprep.subr.mxu0 %v4666_v5 }
 0xbee   : > { %v2056_v25 = vpop.f32.mrf.mxu1 }
 0xbf0   : > { %v4174_v26 = vpop.f32.mrf.mxu1 }
 0xbf2   : > { %v1983_v28 = vpop.f32.mrf.mxu0 }
 0xbf3   : > { %v2057_v31 = vadd.f32 %v2056_v25, %v1983_v28 }
 0xbf4   : > { %v4169_v32 = vpop.f32.mrf.mxu0 }
 0xbf6   : > { %v2134_v33 = vpop.f32.mrf.mxu0 }
 0xbf7   : > { %v2138_v34 = vsel %vm618_vm2, %v2134_v33, -inf }
 0xbf8   : > { %2139 = vmax.xlane.f32.xlu0 %v2138_v34  ;;  %v4179_v35 = vpop.f32.mrf.mxu0 }
 0xc0e   : > { %2149 = vrot.lane.b32.xlu0 %v5025_v30, %s4673_s28 }
 0xc12   : > { %2299 = vrot.lane.b32.xlu0 %v4936_v21, %s4682_s30 }
 0xc81   : > { %v2140_v36 = vpop.xlane.xlu0 %2139 }
 0xc82   : > { %v2141_v29 = vsub.f32 %v2134_v33, %v2140_v36 }
 0xc84   : > { %v2142_v37 = vmul.f32 1.442695, %v2141_v29 }
 0xc85   : > { %v2150_v38 = vpop.permute.xlu0 %2149 }
 0xc86   : > { %4433 = vpow2.f32 %v2142_v37  ;;  %4181 = vmatpush3.msra.mxu1 %v2150_v38 }
 0xc87   : > { %4190 = vmatprep.subr.mxu1 %v4666_v5 }
 0xc89   : > { %v2300_v44 = vpop.permute.xlu0 %2299 }
 0xc93   : > { %v4434_v39 = vpop.eup %4433 }
 0xc94   : > { %v2144_v40 = vsel %vm618_vm2, %v4434_v39, 0.0 }
 0xc95   : > { %2145 = vadd.xlane.f32.xlu1 %v2144_v40 }
 0xca6   : > { %2301 = vrot.lane.b32.xlu1 %v5025_v30, %s4676_s13 }
 0xd1e   : > { %v2146_v41 = vpop.xlane.xlu1 %2145 }
 0xd1f   : > { %4435 = vrcp.f32 %v2146_v41 }
 0xd22   : > { %v2302_v21 = vpop.permute.xlu1 %2301 }
 0xd2c   : > { %v4436_v42 = vpop.eup %4435 }
 0xd2d   : > { %v2148_v43 = vmul.f32 %v4436_v42, %v4434_v39 }
 0xd2f   : > { %4183 = vmatmul.mubr.msk.f32.vlgmr.msra.gmra.mxu1 %vm618_vm2, %v2148_v43 }
 0xd30   : > { %4191 = vmatpush3.xpose.msk.msra.mxu1 %vm618_vm2, %v2302_v21  ;;  %4192 = vmatprep.mubr.msk.f32.mxu1 %vm4667_vm1, %v4666_v5 }
 0xd31   : > { %4200 = vmatprep.subr.mxu1 %v4666_v5 }
 0xd33   : > { %4193 = vmatmul.mubr.msk.f32.vlgmr.msra.gmra.mxu1 %vm618_vm2, %v2300_v44 }
 0xd34   : > { %4202 = vmatprep.mubr.msk.f32.mxu1 %vm4667_vm1, %v4666_v5  ;;  %4201 = vmatpush3.msra.mxu1 %v1584_v56 }
 0xd35   : > { %4216 = vmatprep.subr.mxu1 %v4666_v5 }
 0xdef   : > { %v2221_v46 = vpop.f32.mrf.mxu1 }
 0xdf0   : > { %4188 = vmatmul.mubr.msk.f32.vlgmr.msra.gmra.mxu0 %vm618_vm2, %v2221_v46 }
 0xdf1   : > { %v4184_v47 = vpop.f32.mrf.mxu1  ;;  %4197 = vmatprep.mubr.msk.f32.mxu0 %vm4667_vm1, %v4666_v5 }
 0xdf3   : > { %v2373_v48 = vpop.f32.mrf.mxu1 }
 0xdf4   : > { %v2377_v49 = vsel %vm618_vm2, %v2373_v48, -inf }
 0xdf5   : > { %2378 = vmax.xlane.f32.xlu1 %v2377_v49  ;;  %v4194_v50 = vpop.f32.mrf.mxu1 }
 0xe06   : > { %2702 = vrot.lane.b32.xlu1 %v5025_v30, %s4677_s9  ;;  %s5331_s9 = sshll.u32 %s4889_s2, 3 }
 0xe0a   : > { %2700 = vrot.lane.b32.xlu1 %v5025_v30, %s4672_s27 }
 0xe0e   : > { %2862 = vrot.lane.b32.xlu1 %v5025_v30, %s4671_s26  ;;  %s3780_s26 = scalar_lea.sflag [#allocation5], %s4889_s2 }
 0xe7e   : > { %v2379_v51 = vpop.xlane.xlu1 %2378 }
 0xe7f   : > { %v2380_v52 = vsub.f32 %v2373_v48, %v2379_v51 }
 0xe81   : > { %v2381_v53 = vmul.f32 1.442695, %v2380_v52 }
 0xe82   : > { %v2703_v24 = vpop.permute.xlu1 %2702 }
 0xe83   : > { %4437 = vpow2.f32 %v2381_v53 }
 0xe90   : > { %v4438_v54 = vpop.eup %4437 }
 0xe91   : > { %v2383_v55 = vsel %vm618_vm2, %v4438_v54, 0.0 }
 0xe92   : > { %2384 = vadd.xlane.f32.xlu0 %v2383_v55 }
 0xea8   : > { %2388 = vrot.lane.b32.xlu0 %v5025_v30, %s4675_s24 }
 0xeac   : > { %2864 = vrot.lane.b32.xlu0 %v5025_v30, %s4680_s14 }
 0xeb0   : > { %v2294_v57 = vpop.f32.mrf.mxu0 }
 0xeb1   : > { %v2298_v58 = vadd.f32 %v2294_v57, %v2057_v31  ;;  %v2701_v31 = vpop.permute.xlu1 %2700 }
 0xeb2   : > { %v4189_v59 = vpop.f32.mrf.mxu0 }
 0xeb3   : > { %v2697_v59 = vld [vmem:[#allocation10 + $0x48] sm:$0xff] }
 0xeb5   : > { %v2863_v34 = vpop.permute.xlu1 %2862 }
 0xf1b   : > { %v2385_v60 = vpop.xlane.xlu0 %2384 }
 0xf1c   : > { %4439 = vrcp.f32 %v2385_v60 }
 0xf1f   : > { %v2389_v61 = vpop.permute.xlu0 %2388 }
 0xf20   : > { %4196 = vmatpush3.msra.mxu0 %v2389_v61 }
 0xf21   : > { %4205 = vmatprep.subr.mxu0 %v4666_v5 }
 0xf23   : > { %v2865_v27 = vpop.permute.xlu0 %2864 }
 0xf29   : > { %v4440_v62 = vpop.eup %4439 }
 0xf2a   : > { %v2387_v63 = vmul.f32 %v4440_v62, %v4438_v54 }
 0xf2c   : > { %4198 = vmatmul.mubr.msk.f32.vlgmr.msra.gmra.mxu0 %vm618_vm2, %v2387_v63 }
 0xf2d   : > { %4213 = vmatprep.mubr.msk.f32.mxu0 %vm4667_vm1, %v4666_v5  ;;  %4206 = vmatpush3.msra.mxu0 %v2548_v0 }
 0xf2e   : > { %4207 = vmatprep.subr.mxu0 %v4666_v5 }
 0xf2f   : > { %4208 = vmatpush3.msra.mxu0 %v2547_v18 }
 0xf30   : > { %4209 = vmatprep.subr.mxu0 %v4666_v5 }
 0xf31   : > { %4210 = vmatpush3.msra.mxu0 %v2546_v2 }
 0xf32   : > { %4211 = vmatprep.subr.mxu0 %v4666_v5 }
 0xf33   : > { %4212 = vmatpush3.msra.mxu0 %v2545_v22 }
 0xf34   : > { %4227 = vmatprep.subr.mxu0 %v4666_v5 }
 0xfec   : > { %v2460_v7 = vpop.f32.mrf.mxu0 }
 0xfed   : > { %4203 = vmatmul.mubr.msk.f32.vlgmr.msra.gmra.mxu1 %vm618_vm2, %v2460_v7 }
 0xfee   : > { %4217 = vmatpush3.msra.mxu1 %v1579_v4  ;;  %v4199_v9 = vpop.f32.mrf.mxu0  ;;  %4224 = vmatprep.mubr.msk.f32.mxu1 %vm4667_vm1, %v4666_v5 }
 0xfef   : > { %4218 = vmatprep.subr.mxu1 %v4666_v5 }
 0xff0   : > { %4219 = vmatpush3.msra.mxu1 %v1578_v8 }
 0xff1   : > { %4220 = vmatprep.subr.mxu1 %v4666_v5 }
 0xff2   : > { %4221 = vmatpush3.msra.mxu1 %v1577_v11 }
 0xff3   : > { %4222 = vmatprep.subr.mxu1 %v4666_v5 }
 0xff4   : > { %4223 = vmatpush3.msra.mxu1 %v1576_v13 }
 0xff5   : > { %4225 = vmatmul.mubr.msk.f32.vlgmr.msra.gmra.mxu1 %vm465_vm0, %v1575_v14  ;;  %4232 = vmatprep.subr.mxu1 %v4666_v5 }
 0xff6   : > { %4233 = vmatpush3.msra.mxu1 %v5146_v15  ;;  %4234 = vmatprep.mubr.msk.f32.mxu1 %vm4667_vm1, %v4666_v5 }
 0xff7   : > { %4242 = vmatprep.subr.mxu1 %v4666_v5 }
0x10ad   : > { %v2533_v20 = vpop.f32.mrf.mxu1 }
0x10ae   : > { %v2537_v23 = vadd.f32 %v2533_v20, %v2298_v58  ;;  %v2696_v58 = vld [vmem:[#allocation10 + $0x40] sm:$0xff] }
0x10af   : > { %v4204_v25 = vpop.f32.mrf.mxu1 }
0x10b0   : > { %v2542_v26 = vadd.f32 %v2541_v19, %v2537_v23 }
0x10b2   : > { %v2543_v28 = vmul.f32 0.89, %v2542_v26  ;;  %v2698_v26 = vld [vmem:[#allocation10 + $0x50] sm:$0xff] }
0x10b4   : > { %4214 = vmatmul.mubr.msk.f32.vlgmr.msra.gmra.mxu0 %vm465_vm0, %v2543_v28 }
0x10b5   : > { %v5161_v32 = vpop.f32.mrf.mxu1  ;;  %4228 = vmatpush3.xpose.msk.msra.mxu0 %vm618_vm2, %v2703_v24  ;;  %4229 = vmatprep.mubr.msk.f32.mxu0 %vm4667_vm1, %v4666_v5 }
0x10b6   : > { %4237 = vmatprep.subr.mxu0 %v4666_v5 }
0x10b7   : > { %v4226_v33 = vpop.f32.mrf.mxu1 }
0x10b8   : > { %4230 = vmatmul.mubr.msk.f32.vlgmr.msra.gmra.mxu0 %vm618_vm2, %v2701_v31 }
0x10b9   : > { %4238 = vmatpush3.xpose.msk.msra.mxu0 %vm618_vm2, %v2865_v27  ;;  %4239 = vmatprep.mubr.msk.f32.mxu0 %vm4667_vm1, %v4666_v5 }
0x10ba   : > { %4247 = vmatprep.subr.mxu0 %v4666_v5 }
0x10bc   : > { %4240 = vmatmul.mubr.msk.f32.vlgmr.msra.gmra.mxu0 %vm618_vm2, %v2863_v34 }
0x10bd   : > { %4249 = vmatprep.mubr.msk.f32.mxu0 %vm4667_vm1, %v4666_v5  ;;  %4248 = vmatpush3.msra.mxu0 %v2697_v59 }
0x10be   : > { %4257 = vmatprep.subr.mxu0 %v4666_v5 }
0x1174   : > { %v5175_v35 = vpop.f32.mrf.mxu0 }
0x1175   : > { %v2692_v59 = vadd.f32 %v5161_v32, %v5175_v35  ;;  %v3976_v32 = vld [vmem:[#allocation2] ss:$0 sm:$0xff] }
0x1176   : > { %v4215_v36 = vpop.f32.mrf.mxu0 }
0x1178   : > { %v2774_v29 = vpop.f32.mrf.mxu0 }
0x1179   : > { %v2778_v37 = vsel %vm618_vm2, %v2774_v29, -inf }
0x117a   : > { %2779 = vmax.xlane.f32.xlu0 %v2778_v37  ;;  %v4231_v38 = vpop.f32.mrf.mxu0 }
0x117c   : > { %v2936_v39 = vpop.f32.mrf.mxu0 }
0x117d   : > { %v2940_v40 = vsel %vm618_vm2, %v2936_v39, -inf }
0x117e   : > { %2941 = vmax.xlane.f32.xlu1 %v2940_v40  ;;  %v4241_v41 = vpop.f32.mrf.mxu0 }
0x117f   : > { %v2699_v41 = vld [vmem:[#allocation10 + $0x58] sm:$0xff] }
0x118f   : > { %2952 = vrot.lane.b32.xlu1 %v5146_v15, %s4668_s29 }
0x1193   : > { %3174 = vrot.lane.b32.xlu1 %v5025_v30, %s4678_s6  ;;  %s432_s6 = scalar_lea.vmem [#allocation13], %s5331_s9 }
0x1203   : > { %v2780_v42 = vpop.xlane.xlu0 %2779 }
0x1204   : > { %v2781_v43 = vsub.f32 %v2774_v29, %v2780_v42 }
0x1206   : > { %v2782_v21 = vmul.f32 1.442695, %v2781_v43 }
0x1207   : > { %v2942_v44 = vpop.xlane.xlu1 %2941 }
0x1208   : > { %4441 = vpow2.f32 %v2782_v21  ;;  %v2943_v45 = vsub.f32 %v2936_v39, %v2942_v44 }
0x120a   : > { %v2944_v46 = vmul.f32 1.442695, %v2943_v45 }
0x120b   : > { %v2953_v55 = vpop.permute.xlu1 %2952 }
0x120c   : > { %4443 = vpow2.f32 %v2944_v46 }
0x120f   : > { %v3175_v3 = vpop.permute.xlu1 %3174 }
0x1215   : > { %v4442_v47 = vpop.eup %4441 }
0x1216   : > { %v2784_v48 = vsel %vm618_vm2, %v4442_v47, 0.0 }
0x1217   : > { %2785 = vadd.xlane.f32.xlu0 %v2784_v48  ;;  %v3663_v48 = vld [vmem:[#allocation11 + $0x58] sm:$0xff] }
0x1219   : > { %v4444_v49 = vpop.eup %4443 }
0x121a   : > { %v2946_v50 = vsel %vm618_vm2, %v4444_v49, 0.0 }
0x121b   : > { %2947 = vadd.xlane.f32.xlu0 %v2946_v50  ;;  %v3661_v50 = vld [vmem:[#allocation11 + $0x48] sm:$0xff] }
0x1231   : > { %3176 = vrot.lane.b32.xlu0 %v5025_v30, %s4681_s4  ;;  %s3920_s4 = sld [smem:[#allocation3 + $0x1]] }
0x12a0   : > { %v2786_v51 = vpop.xlane.xlu0 %2785 }
0x12a1   : > { %4445 = vrcp.f32 %v2786_v51  ;;  %v3660_v51 = vld [vmem:[#allocation11 + $0x40] sm:$0xff] }
0x12a4   : > { %v2948_v52 = vpop.xlane.xlu0 %2947 }
0x12a5   : > { %4447 = vrcp.f32 %v2948_v52  ;;  %v3655_v52 = vrot.slane %v5129_v1, %v460_v6  ;;  %v3975_v1 = vld [vmem:[%s5300_s8] ss:$0 sm:$0xff] }
0x12a8   : > { %v3177_v63 = vpop.permute.xlu0 %3176 }
0x12ae   : > { %v4446_v53 = vpop.eup %4445 }
0x12af   : > { %v2788_v54 = vmul.f32 %v4446_v53, %v4442_v47 }
0x12b1   : > { %4235 = vmatmul.mubr.msk.f32.vlgmr.msra.gmra.mxu1 %vm618_vm2, %v2788_v54 }
0x12b2   : > { %v4448_v56 = vpop.eup %4447  ;;  %4243 = vmatpush3.msra.mxu1 %v2953_v55  ;;  %4244 = vmatprep.mubr.msk.f32.mxu1 %vm4667_vm1, %v4666_v5  ;;  %v3657_v55 = vstv %s3920_s4 }
0x12b3   : > { %v2950_v57 = vmul.f32 %v4448_v56, %v4444_v49  ;;  %4252 = vmatprep.subr.mxu1 %v4666_v5  ;;  %v3662_v49 = vld [vmem:[#allocation11 + $0x50] sm:$0xff] }
0x12b5   : > { %4245 = vmatmul.mubr.msk.f32.vlgmr.msra.gmra.mxu1 %vm618_vm2, %v2950_v57 }
0x12b6   : > { %4254 = vmatprep.mubr.msk.f32.mxu1 %vm4667_vm1, %v4666_v5  ;;  %4253 = vmatpush3.msra.mxu1 %v2696_v58 }
0x12b7   : > { %4262 = vmatprep.subr.mxu1 %v4666_v5 }
0x1371   : > { %v2858_v60 = vpop.f32.mrf.mxu1 }
0x1372   : > { %4255 = vmatmul.mubr.msk.f32.vlgmr.msra.gmra.mxu1 %vm618_vm2, %v2858_v60 }
0x1373   : > { %v4236_v61 = vpop.f32.mrf.mxu1  ;;  %4264 = vmatprep.mubr.msk.f32.mxu1 %vm4667_vm1, %v4666_v5 }
0x1375   : > { %v3024_v62 = vpop.f32.mrf.mxu1 }
0x1376   : > { %4250 = vmatmul.mubr.msk.f32.vlgmr.msra.gmra.mxu0 %vm618_vm2, %v3024_v62 }
0x1377   : > { %4258 = vmatpush3.xpose.msk.msra.mxu0 %vm618_vm2, %v3177_v63  ;;  %v4246_v0 = vpop.f32.mrf.mxu1  ;;  %4259 = vmatprep.mubr.msk.f32.mxu0 %vm4667_vm1, %v4666_v5 }
0x1378   : > { %4267 = vmatprep.subr.mxu0 %v4666_v5  ;;  %v4683_v0 = vmov 0  }
0x1379   : > { %4407 = vset.pattern.permute.xlu1 %v4683_v0  ;;  %4408 = vset.pattern.permute.xlu0 %v4683_v0 }
0x137a   : > { %4260 = vmatmul.mubr.msk.f32.vlgmr.msra.gmra.mxu0 %vm618_vm2, %v3175_v3 }
0x137b   : > { %4269 = vmatprep.mubr.msk.f32.mxu0 %vm4667_vm1, %v4666_v5  ;;  %4268 = vmatpush3.msra.mxu0 %v2698_v26 }
0x137c   : > { %4277 = vmatprep.subr.mxu0 %v4666_v5 }
0x1432   : > { %v3170_v4 = vpop.f32.mrf.mxu1 }
0x1434   : > { %v4256_v7 = vpop.f32.mrf.mxu1 }
0x1436   : > { %v3097_v8 = vpop.f32.mrf.mxu0 }
0x1437   : > { %v3171_v9 = vadd.f32 %v3170_v4, %v3097_v8 }
0x1438   : > { %v4251_v10 = vpop.f32.mrf.mxu0 }
0x143a   : > { %v3248_v11 = vpop.f32.mrf.mxu0 }
0x143b   : > { %v3252_v17 = vsel %vm618_vm2, %v3248_v11, -inf }
0x143c   : > { %3253 = vmax.xlane.f32.xlu1 %v3252_v17  ;;  %v4261_v12 = vpop.f32.mrf.mxu0  ;;  %v4461_v17 = vld [vmem:[%s4895_s0] sm:$0xff] }
0x144d   : > { %3415 = vrot.lane.b32.xlu1 %v5025_v30, %s4682_s30 }
0x1451   : > { %3413 = vrot.lane.b32.xlu1 %v5025_v30, %s4679_s21  ;;  %s3793_s21 = sshll.u32 %s432_s6, 4  ;;  %s3794_s21 = int_to_ptr.vmem [resolvable:$true] %s3793_s21 }
0x1452   : > { %s4579_s27 = scalar_lea.vmem %s3794_s21, 128 }
0x1453   : > { %p4580_p12 = scmp.ne.s32.totalorder %s3794_s21, %s4579_s27 }
0x1455   : > { %p4581_p0 = pnand %p4580_p12, %p5332_p5 }
0x1457   : > { %p4582_p8 = pneg %p4581_p0 }
0x14c5   : > { %v3254_v13 = vpop.xlane.xlu1 %3253 }
0x14c6   : > { %v3255_v14 = vsub.f32 %v3248_v11, %v3254_v13 }
0x14c8   : > { %v3256_v18 = vmul.f32 1.442695, %v3255_v14 }
0x14c9   : > { %v3416_v24 = vpop.permute.xlu1 %3415 }
0x14ca   : > { %4449 = vpow2.f32 %v3256_v18 }
0x14cd   : > { %v3414_v25 = vpop.permute.xlu1 %3413 }
0x14d7   : > { %v4450_v2 = vpop.eup %4449 }
0x14d8   : > { %v3258_v22 = vsel %vm618_vm2, %v4450_v2, 0.0 }
0x14d9   : > { %3259 = vadd.xlane.f32.xlu0 %v3258_v22 }
0x14ef   : > { %3263 = vrot.lane.b32.xlu0 %v5146_v15, %s4674_s25 }
0x1562   : > { %v3260_v19 = vpop.xlane.xlu0 %3259 }
0x1563   : > { %4451 = vrcp.f32 %v3260_v19 }
0x1566   : > { %v3264_v20 = vpop.permute.xlu0 %3263 }
0x1567   : > { %4263 = vmatpush3.msra.mxu1 %v3264_v20 }
0x1568   : > { %4272 = vmatprep.subr.mxu1 %v4666_v5 }
0x1570   : > { %v4452_v23 = vpop.eup %4451 }
0x1571   : > { %v3262_v30 = vmul.f32 %v4452_v23, %v4450_v2 }
0x1573   : > { %4265 = vmatmul.mubr.msk.f32.vlgmr.msra.gmra.mxu1 %vm618_vm2, %v3262_v30 }
0x1574   : > { %4273 = vmatpush3.xpose.msk.msra.mxu1 %vm618_vm2, %v3416_v24  ;;  %4274 = vmatprep.mubr.msk.f32.mxu1 %vm4667_vm1, %v4666_v5 }
0x1575   : > { %4282 = vmatprep.subr.mxu1 %v4666_v5 }
0x1577   : > { %4275 = vmatmul.mubr.msk.f32.vlgmr.msra.gmra.mxu1 %vm618_vm2, %v3414_v25 }
0x1578   : > { %4284 = vmatprep.mubr.msk.f32.mxu1 %vm4667_vm1, %v4666_v5  ;;  %4283 = vmatpush3.msra.mxu1 %v2699_v41 }
0x1633   : > { %v3335_v28 = vpop.f32.mrf.mxu1 }
0x1634   : > { %4270 = vmatmul.mubr.msk.f32.vlgmr.msra.gmra.mxu0 %vm618_vm2, %v3335_v28 }
0x1635   : > { %v4266_v31 = vpop.f32.mrf.mxu1  ;;  %4279 = vmatprep.mubr.msk.f32.mxu0 %vm4667_vm1, %v4666_v5 }
0x1637   : > { %v3487_v33 = vpop.f32.mrf.mxu1 }
0x1638   : > { %v3491_v27 = vsel %vm618_vm2, %v3487_v33, -inf }
0x1639   : > { %3492 = vmax.xlane.f32.xlu0 %v3491_v27  ;;  %v4276_v34 = vpop.f32.mrf.mxu1 }
0x164f   : > { %3502 = vrot.lane.b32.xlu0 %v5146_v15, %s4676_s13  ;;  %s3979_s13 = sshll.u32 %s4764_s20, 7  ;;  %s4684_s20 = smov [#allocation13]  }
0x1650   : > { %s3791_s11 = scalar_lea.hbm %s5302_s10, %s3979_s13  ;;  %s4583_s4 = sshll.u32 %s4684_s20, 4  ;;  %s4584_s4 = int_to_ptr.vmem [resolvable:$false] %s4583_s4 }
0x1651   : > { %s4585_s29 = scalar_lea.vmem %s4584_s4, 256  ;;  %p4586_p11 = scmp.lt.s32.totalorder %s3794_s21, %s4584_s4 }
0x1652   : > { %p4587_p13 = scmp.lt.s32.totalorder %s4585_s29, %s4579_s27 }
0x1654   : > { %p4588_p2 = por %p4587_p13, %p4586_p11 }
0x1656   : > { %p4589_p4 = pnand %p4588_p2, %p4582_p8 }
0x16c2   : > { %v3493_v36 = vpop.xlane.xlu0 %3492 }
0x16c3   : > { %v3494_v29 = vsub.f32 %v3487_v33, %v3493_v36 }
0x16c5   : > { %v3495_v37 = vmul.f32 1.442695, %v3494_v29 }
0x16c6   : > { %v3503_v38 = vpop.permute.xlu0 %3502 }
0x16c7   : > { %4453 = vpow2.f32 %v3495_v37  ;;  %4278 = vmatpush3.msra.mxu0 %v3503_v38 }
0x16c8   : > { %4287 = vmatprep.subr.mxu0 %v4666_v5 }
0x16d4   : > { %v4454_v39 = vpop.eup %4453 }
0x16d5   : > { %v3497_v40 = vsel %vm618_vm2, %v4454_v39, 0.0 }
0x16d6   : > { %3498 = vadd.xlane.f32.xlu1 %v3497_v40 }
0x16f4   : > { %v3408_v42 = vpop.f32.mrf.mxu0 }
0x16f5   : > { %v3412_v43 = vadd.f32 %v3408_v42, %v3171_v9 }
0x16f6   : > { %v4271_v21 = vpop.f32.mrf.mxu0 }
0x175f   : > { %v3499_v44 = vpop.xlane.xlu1 %3498 }
0x1760   : > { %4455 = vrcp.f32 %v3499_v44 }
0x176d   : > { %v4456_v15 = vpop.eup %4455 }
0x176e   : > { %v3501_v45 = vmul.f32 %v4456_v15, %v4454_v39 }
0x1770   : > { %4280 = vmatmul.mubr.msk.f32.vlgmr.msra.gmra.mxu0 %vm618_vm2, %v3501_v45 }
0x1771   : > { %4295 = vmatprep.mubr.msk.f32.mxu0 %vm4667_vm1, %v4666_v5  ;;  %4288 = vmatpush3.msra.mxu0 %v3663_v48 }
0x1772   : > { %4289 = vmatprep.subr.mxu0 %v4666_v5 }
0x1773   : > { %4290 = vmatpush3.msra.mxu0 %v3662_v49 }
0x1774   : > { %4291 = vmatprep.subr.mxu0 %v4666_v5 }
0x1775   : > { %4292 = vmatpush3.msra.mxu0 %v3661_v50 }
0x1776   : > { %4293 = vmatprep.subr.mxu0 %v4666_v5  ;;  %v3974_v5 = vld [vmem:[%s5299_s7] ss:$0 sm:$0xff] }
0x1777   : > { %4294 = vmatpush3.msra.mxu0 %v3660_v51 }
0x1830   : > { %v3574_v46 = vpop.f32.mrf.mxu0 }
0x1831   : > { %4285 = vmatmul.mubr.msk.f32.vlgmr.msra.gmra.mxu1 %vm618_vm2, %v3574_v46 }
0x1832   : > { %v4281_v47 = vpop.f32.mrf.mxu0 }
0x18f1   : > { %v3647_v53 = vpop.f32.mrf.mxu1 }
0x18f2   : > { %v3651_v54 = vadd.f32 %v3647_v53, %v3412_v43 }
0x18f3   : > { %v4286_v56 = vpop.f32.mrf.mxu1 }
0x18f4   : > { %v3656_v57 = vadd.f32 %v3655_v52, %v3651_v54 }
0x18f6   : > { %v3658_v58 = vmul.f32 %v3657_v55, %v3656_v57 }
0x18f8   : > { %4296 = vmatmul.mubr.msk.f32.vlgmr.msra.gmra.mxu0 %vm465_vm0, %v3658_v58 }
0x19b8   : > { %v3733_v60 = vpop.f32.mrf.mxu0 }
0x19b9   : > { %v3737_v61 = vadd.f32 %v3733_v60, %v2692_v59 }
0x19ba   : > { %v4297_v16 = vpop.f32.mrf.mxu0 }
0x19bb   : > { %v3745_v6 = vadd.f32 %v3974_v5, %v3737_v61 }
0x19bd   : > { %v3753_v62 = vmul.f32 %v3975_v1, %v3745_v6 }
0x19bf   : > { %v3754_v63 = vsel %vm465_vm0, %v3753_v62, 0.0 }
0x19c0   : > { %3755 = vadd.xlane.f32.xlu1 %v3754_v63 }
0x1a49   : > { %v3756_v35 = vpop.xlane.xlu1 %3755 }
0x1a4a   : > { %v3764_v3 = vadd.f32 %v3976_v32, %v3756_v35 }
0x1a4c   : > { %v3977_v4 = vmul.f32 -1.442695, %v3764_v3 }
0x1a4e   : > { %4457 = vpow2.f32 %v3977_v4 }
0x1a5b   : > { %v4458_v7 = vpop.eup %4457 }
0x1a5c   : > { %v3768_v8 = vadd.f32 1.0, %v4458_v7 }
0x1a5e   : > { %4459 = vrcp.f32 %v3768_v8 }
0x1a6b   : > { %v4460_v9 = vpop.eup %4459 }
0x1a6c   : > { %3773 = vperm.xlu1 %4407, %v4460_v9  }
0x1ae7   : > { %v3774_v10 = vpop.permute.xlu1 %3773 }
0x1ae8   : > { %v3776_v11 = vmul.f32 %v3774_v10, %v3745_v6 }
0x1aea   : > { %v3777_v12 = vadd.f32 %v4461_v17, %v3776_v11 }
0x1aec   : > { %3778 = vst.msk [vmem:[%s432_s6] sm:$0xff] %vm465_vm0, %v3777_v12 }
0x1aed   : > { %4592 = shalt.err (!%p4589_p4)
}
0x1aee   : > { %s4593_s0 = scalar_lea.hbm %s3791_s11, 128  ;;  %s4597_s25 = scalar_lea.hbm %s5302_s10, 256 }
0x1aef   : > { %p4594_p1 = scmp.ne.s32.totalorder %s3791_s11, %s4593_s0  ;;  %p4598_p9 = scmp.lt.s32.totalorder %s3791_s11, %s5302_s10 }
0x1af0   : > { %p4599_p10 = scmp.lt.s32.totalorder %s4597_s25, %s4593_s0 }
0x1af1   : > { %p4595_p3 = pnand %p4594_p1, %p5332_p5 }
0x1af2   : > { %p4600_p7 = por %p4599_p10, %p4598_p9 }
0x1af3   : > { %p4596_p6 = pneg %p4595_p3 }
0x1af5   : > { %p4601_p12 = pnand %p4600_p7, %p4596_p6 }
0x1af7   : > { %4604 = shalt.err (!%p4601_p12)
}
0x1af8   : > { %4316 = dma.vmem_to_hbm [thread:$0]  (%p5332_p5), %s3794_s21, 128, %s3791_s11, %s3780_s26  }
0x1af9 PF: > { %s3805_s9 = sand.u32 1, %s4643_s15   ;;  %p5333_p0 = scmp.ne.s32.totalorder %s5321_s23, 0 }
0x1afa   : > { %p5334_p8 = scmp.ge.s32.totalorder %s4655_s18, 2  ;;  %s3806_s6 = scalar_lea.sflag [#allocation5], %s3805_s9 }
0x1afc   : > { %p4336_p11 = pnand %p5334_p8, %p5333_p0 }
0x1afe   : > { %p4337_p13 = pneg %p4336_p11 }
0x1b00   : > { %4638 = dma.done.wait (%p4337_p13), %s3806_s6, 128  }
0x1b01   : > { %4640 = vsyncadd (%p4337_p13), %s3806_s6, 4294967168  ;;  %p28_p2 = scmp.ge.s32.totalorder %s4822_s22, 4   ;;  %s5335_s15 = smov %s4647_s16 }
0x1b02   : > { %s5336_s16 = smov %s4651_s17  ;;  %s5337_s17 = smov %s4833_s12 }
0x1b03   : > { %s5338_s18 = smov %s4822_s22  ;;  %30 = sbr.rel (!%p28_p2) target bundleno = 13 (0xd), region = 126 }
0x1b08   :  { %3811 = vsyncpa [#allocation4], 1 }
0x1b09   :  { %3813 = vsyncpa [#allocation4 + $0x1], 1 }
0x1b0a   :  { %3814 = vsyncpa [#allocation9], 1 }
0x1b0b   :  { %3815 = vsyncpa [#allocation12], 1 }
0x1b0c   :  { %3816 = vsyncpa [#allocation5], 1 }
0x1b0d   :  { %3818 = vsyncpa [#allocation5 + $0x1], 1 }
0x1b0e   :  { %3819 = vsyncpa [#allocation6], 1 }
0x1b0f   :  { %3821 = vsyncpa [#allocation6 + $0x1], 1 }

</bundles_post_ra>
